<compile_context>
chip_gen: v5e
topology: v5e:2x2
jax: 0.10.0
libtpu: 0.0.40
codegen_flags: <defaults>
</compile_context>

<pallas_src>
import functools
import math

import jax
import jax.numpy as jnp
from jax.experimental import pallas as pl
from jax.experimental.pallas import tpu as pltpu


def _round_up(x, m):
    return ((x + m - 1) // m) * m


def _pick_tile_n(N, tn_req):
    """Pick a lane-dense (128-multiple) N tile and the padded N extent."""
    n_pad = _round_up(N, 128)
    tn_req = max(128, min(tn_req, n_pad))
    tn_req = (tn_req // 128) * 128
    tn = 128
    for cand in range(tn_req, 127, -128):
        if n_pad % cand == 0:
            tn = cand
            break
    # Prefer >= 2 N-tiles when N is wide enough: the N axis is the only "parallel"
    # grid axis and is what shards across v7x's two TensorCores.
    if n_pad // tn < 2 and n_pad > 128:
        start = (n_pad // 2) // 128 * 128
        tn = 128
        for cand in range(start, 127, -128):
            if n_pad % cand == 0:
                tn = cand
                break
    return tn, n_pad


def _make_group_metadata(expert_size, *, num_experts, m_padded, tm):
    """Per-grid-step routing metadata (int32, static length = num_m_tiles + E - 1).

    Returns (group, tile, row_start, row_end, fast, init, acc):
      group : expert id whose weight block this step uses
      tile  : output token-tile index this step writes
      row_start/row_end : [start, end) rows of `tile` owned by `group`
      fast  : 1 = first visit of a tile fully owned by this expert (direct store)
      init  : 1 = zero-initialize the resident output block this step
      acc   : 1 = masked partial accumulate this step
    Padding steps freeze all block indices (zero DMAs); spare padding steps zero-fill
    output tiles not covered by any expert (defensive for sum(expert_size) < T).
    """
    es = expert_size.astype(jnp.int32)
    ends = jnp.cumsum(es)
    starts = ends - es
    total = ends[-1]
    num_m_tiles = m_padded // tm
    num_steps = num_m_tiles + num_experts - 1

    first_tile = starts // tm
    last_tile = jnp.where(es > 0, (ends - 1) // tm, first_tile - 1)
    tiles_per = jnp.maximum(last_tile - first_tile + 1, 0)

    step_ends = jnp.cumsum(tiles_per)
    step_starts = step_ends - tiles_per
    total_steps = step_ends[-1]

    i = jnp.arange(num_steps, dtype=jnp.int32)
    raw_group = jnp.sum((i[:, None] >= step_ends[None, :]).astype(jnp.int32), axis=1)
    valid = i < total_steps
    group_v = jnp.minimum(raw_group, num_experts - 1)
    tile_v = first_tile[group_v] + (i - step_starts[group_v])

    # Expert id of the last real step; padding/tail steps reuse it so the weight block
    # index never changes there (no wasted weight DMA).
    last_step = jnp.maximum(total_steps - 1, 0)
    last_group = jnp.clip(jnp.sum((last_step >= step_ends).astype(jnp.int32)),
                          0, num_experts - 1)

    covered = jnp.where(total > 0, (total - 1) // tm + 1, 0)   # tiles holding real rows
    tail_idx = covered + (i - total_steps)                     # uncovered-tile walker
    is_tail = jnp.logical_and(jnp.logical_not(valid), tail_idx < num_m_tiles)
    freeze_tile = jnp.where(covered < num_m_tiles, num_m_tiles - 1,
                            jnp.maximum(covered - 1, 0))

    tile = jnp.where(valid, tile_v, jnp.where(is_tail, tail_idx, freeze_tile))
    tile = jnp.clip(tile, 0, num_m_tiles - 1)
    group = jnp.where(valid, group_v, last_group)

    row_start = jnp.where(valid, jnp.maximum(starts[group_v], tile_v * tm), 0)
    row_end = jnp.where(valid, jnp.minimum(ends[group_v], (tile_v + 1) * tm), 0)

    prev_tile = jnp.concatenate([jnp.full((1,), -1, jnp.int32), tile[:-1]])
    new_tile = tile != prev_tile
    full = (row_start == tile * tm) & (row_end == (tile + 1) * tm)

    fast = new_tile & valid & full
    init = new_tile & jnp.logical_not(fast) & (valid | is_tail)
    acc = (row_end > row_start) & jnp.logical_not(fast)

    as_i32 = lambda a: a.astype(jnp.int32)
    return (as_i32(group), as_i32(tile), as_i32(row_start), as_i32(row_end),
            as_i32(fast), as_i32(init), as_i32(acc))


def _parallel_experts_kernel(has_bias,
                             group_ref, tile_ref, rstart_ref, rend_ref,
                             fast_ref, init_ref, acc_ref,
                             x_ref, w_ref, *refs):
    if has_bias:
        b_ref, o_ref = refs
    else:
        b_ref = None
        (o_ref,) = refs
    del group_ref  # consumed by the index_maps only
    step = pl.program_id(1)
    tm = x_ref.shape[0]

    def matmul():
        # bf16 x bf16 -> f32 on the MXU; bias add stays in f32 on the VPU.
        out = jnp.dot(x_ref[...], w_ref[0], preferred_element_type=jnp.float32)
        if has_bias:
            out = out + b_ref[0]
        return out

    # Fast path: first visit of a tile fully owned by this expert — single direct
    # store, no zero-init, no mask, no read-modify-write.
    @pl.when(fast_ref[step] == 1)
    def _full_tile():
        o_ref[...] = matmul().astype(o_ref.dtype)

    # First visit of a partially-owned (or expert-less tail) tile: zero the resident
    # output block.
    @pl.when(init_ref[step] == 1)
    def _zero_init():
        o_ref[...] = jnp.zeros_like(o_ref)

    # Partial tile: accumulate only the rows owned by this expert. Each row is written
    # by exactly one expert (rows grouped & disjoint), so casting the masked partial to
    # the output dtype before the add is exact.
    @pl.when(acc_ref[step] == 1)
    def _partial_tile():
        row0 = tile_ref[step] * tm
        rows = row0 + jax.lax.broadcasted_iota(jnp.int32, (tm, 1), 0)
        in_group = (rows >= rstart_ref[step]) & (rows < rend_ref[step])
        contrib = jnp.where(in_group, matmul(), 0.0).astype(o_ref.dtype)
        o_ref[...] = o_ref[...] + contrib


def parallel_experts_forward(inputs, expert_size, weight, bias=None, *, tm=256, tn=256):
    """Pallas grouped expert GEMM: out[t] = inputs[t] @ weight[e(t)] + bias[e(t)]."""
    M, K = inputs.shape
    E, Kw, N = weight.shape
    assert K == Kw, "weight input_size must match inputs feature dim"
    out_dtype = inputs.dtype
    has_bias = bias is not None

    # Use the dtypes as given; store weights pre-cast (e.g. bf16) outside the hot path —
    # an in-jit cast would materialize a full E*K*N HBM copy every forward.
    if weight.dtype != inputs.dtype:
        weight = weight.astype(inputs.dtype)   # fallback only; pre-cast for performance
    compute_dtype = inputs.dtype

    # --- tile sizes (respect the (8, 128) block constraints) ---
    tm = _round_up(max(8, min(tm, _round_up(M, 8))), 8)
    m_pad = _round_up(M, tm)
    tn, n_pad = _pick_tile_n(N, tn)
    num_m_tiles = m_pad // tm
    num_n_tiles = n_pad // tn
    num_steps = num_m_tiles + E - 1   # static: each expert adds at most one shared tile

    x = inputs
    if m_pad != M:
        x = jnp.pad(x, ((0, m_pad - M), (0, 0)))
    w = weight
    if n_pad != N:
        w = jnp.pad(w, ((0, 0), (0, 0), (0, n_pad - N)))
    operands = [x, w]
    in_specs = [
        # x token tile: which tile is read depends on the prefetched step metadata.
        pl.BlockSpec((tm, K), lambda n, i, g, t, rs, re, fa, ii, ac: (t[i], 0)),
        # one expert's weight block (pipelined per step).
        # TODO(synk): on v5e add pipeline_mode=pl.Buffered(3) here to hide exposed
        # weight DMA on expert-switch steps (VMEM headroom exists on v5e/v6e).
        pl.BlockSpec((1, K, tn), lambda n, i, g, t, rs, re, fa, ii, ac: (g[i], 0, n)),
    ]
    if has_bias:
        b = bias.astype(jnp.float32)
        if n_pad != N:
            b = jnp.pad(b, ((0, 0), (0, n_pad - N)))
        operands.append(b.reshape(E, 1, n_pad))
        in_specs.append(
            pl.BlockSpec((1, 1, tn), lambda n, i, g, t, rs, re, fa, ii, ac: (g[i], 0, n)))

    meta = _make_group_metadata(expert_size, num_experts=E, m_padded=m_pad, tm=tm)

    # VMEM budget: double-buffered x + w blocks, double-buffered out block, bias.
    itemsize = jnp.dtype(compute_dtype).itemsize
    vmem_est = (2 * (tm * K + K * tn) * itemsize
                + 2 * tm * tn * jnp.dtype(out_dtype).itemsize
                + (2 * tn * 4 if has_bias else 0))
    cp = dict(dimension_semantics=("parallel", "arbitrary"))
    if vmem_est > 30 * 1024 * 1024:
        # TODO(synk): for K large enough to blow v7x's 64 MiB even at tn=128, tile K
        # with an extra "arbitrary" grid axis + f32 VMEM scratch accumulator.
        cp["vmem_limit_bytes"] = int(min(vmem_est + (8 << 20), 100 << 20))

    out = pl.pallas_call(
        functools.partial(_parallel_experts_kernel, has_bias),
        out_shape=jax.ShapeDtypeStruct((m_pad, n_pad), out_dtype),
        grid_spec=pltpu.PrefetchScalarGridSpec(
            num_scalar_prefetch=7,
            grid=(num_n_tiles, num_steps),
            in_specs=in_specs,
            out_specs=pl.BlockSpec(
                (tm, tn), lambda n, i, g, t, rs, re, fa, ii, ac: (t[i], n)),
        ),
        compiler_params=pltpu.CompilerParams(**cp),
    )(*meta, *operands)

    if m_pad != M or n_pad != N:
        out = out[:M, :N]
    return out


if __name__ == "__main__":
    def reference(inputs, sizes, weight, bias):
        chunks, off = [], 0
        for e, s in enumerate(sizes):
            r = jnp.dot(inputs[off:off + s], weight[e],
                        preferred_element_type=jnp.float32)
            if bias is not None:
                r = r + bias[e].astype(jnp.float32)
            chunks.append(r)
            off += s
        return jnp.concatenate(chunks, axis=0).astype(inputs.dtype)

    fwd = jax.jit(parallel_experts_forward, static_argnames=("tm", "tn"))
    key = jax.random.PRNGKey(0)

    # ---- Case 1: 8 experts, K=N=128, 256 tokens, with bias, bf16 compute ----
    E1, K1, N1, T1 = 8, 128, 128, 256
    sizes1 = [40, 0, 33, 31, 64, 17, 39, 32]   # empty expert + tile-boundary straddling
    assert sum(sizes1) == T1
    k1, k2, k3, key = jax.random.split(key, 4)
    x1 = jax.random.normal(k1, (T1, K1), dtype=jnp.float32)
    wb = 1.0 / K1                                 # reset_parameters: U(-1/in, 1/in)
    w1 = jax.random.uniform(k2, (E1, K1, N1), minval=-wb, maxval=wb, dtype=jnp.float32)
    bb = 1.0 / math.sqrt(K1)                      # bias: U(-1/sqrt(fan_in), ...)
    b1 = jax.random.uniform(k3, (E1, N1), minval=-bb, maxval=bb, dtype=jnp.float32)
    es1 = jnp.array(sizes1, dtype=jnp.int32)

    # Cast activations/weights to bf16 once, OUTSIDE the jitted hot path.
    x1_bf, w1_bf = x1.astype(jnp.bfloat16), w1.astype(jnp.bfloat16)
    out1 = fwd(x1_bf, es1, w1_bf, b1)
    jax.block_until_ready(out1)
    ref1 = reference(x1_bf, sizes1, w1_bf, b1)
    assert out1.shape == (T1, N1) and out1.dtype == jnp.bfloat16
    assert bool(jnp.all(jnp.isfinite(out1.astype(jnp.float32))))
    assert bool(jnp.allclose(out1.astype(jnp.float32), ref1.astype(jnp.float32),
                             atol=2e-2, rtol=2e-2))

    # ---- Case 2: 4 experts, K=128, N=256, 64 tokens, no bias (no-bias kernel variant,
    #      multi-N-tile path) ----
    E2, K2, N2, T2 = 4, 128, 256, 64
    sizes2 = [10, 0, 30, 24]
    assert sum(sizes2) == T2
    k1, k2, key = jax.random.split(key, 3)
    x2 = jax.random.normal(k1, (T2, K2), dtype=jnp.bfloat16)
    w2 = jax.random.uniform(k2, (E2, K2, N2), minval=-1.0 / K2, maxval=1.0 / K2,
                            dtype=jnp.float32).astype(jnp.bfloat16)
    es2 = jnp.array(sizes2, dtype=jnp.int32)
    out2 = fwd(x2, es2, w2, None)
    jax.block_until_ready(out2)
    ref2 = reference(x2, sizes2, w2, None)
    assert out2.shape == (T2, N2) and out2.dtype == jnp.bfloat16
    assert bool(jnp.all(jnp.isfinite(out2.astype(jnp.float32))))
    assert bool(jnp.allclose(out2.astype(jnp.float32), ref2.astype(jnp.float32),
                             atol=2e-2, rtol=2e-2))

    print("KERNEL_OK")
</pallas_src>

<mosaic_0001>
module attributes {stable_mosaic.version = 11 : i64} {
  func.func @_parallel_experts_kernel(%arg0: i32, %arg1: i32, %arg2: memref<8xi32, #tpu.memory_space<smem>>, %arg3: memref<8xi32, #tpu.memory_space<smem>>, %arg4: memref<8xi32, #tpu.memory_space<smem>>, %arg5: memref<8xi32, #tpu.memory_space<smem>>, %arg6: memref<8xi32, #tpu.memory_space<smem>>, %arg7: memref<8xi32, #tpu.memory_space<smem>>, %arg8: memref<8xi32, #tpu.memory_space<smem>>, %arg9: memref<256x128xbf16, #tpu.memory_space<vmem>>, %arg10: memref<1x128x128xbf16, #tpu.memory_space<vmem>>, %arg11: memref<1x1x128xf32, #tpu.memory_space<vmem>>, %arg12: memref<256x128xbf16, #tpu.memory_space<vmem>>) attributes {dimension_semantics = [#tpu.dimension_semantics<parallel>, #tpu.dimension_semantics<arbitrary>], iteration_bounds = array<i64: 1, 8>, scalar_prefetch = 7 : i64, scratch_operands = 0 : i64, tpu.core_type = #tpu.core_type<tc>, window_params = [{transform_indices = @transform_0, window_bounds = array<i64: 256, 128>}, {transform_indices = @transform_1, window_bounds = array<i64: 1, 128, 128>}, {transform_indices = @transform_2, window_bounds = array<i64: 1, 1, 128>}, {transform_indices = @transform_3, window_bounds = array<i64: 256, 128>}]} {
    %0 = arith.index_cast %arg1 : i32 to index
    %1 = memref.load %arg6[%0] : memref<8xi32, #tpu.memory_space<smem>>
    %c1_i32 = arith.constant 1 : i32
    %2 = arith.cmpi eq, %1, %c1_i32 : i32
    %3 = arith.extui %2 : i1 to i32
    %c0_i32 = arith.constant 0 : i32
    %4 = arith.cmpi ne, %3, %c0_i32 : i32
    scf.if %4 {
      %c0 = arith.constant 0 : index
      %c0_4 = arith.constant 0 : index
      %15 = vector.load %arg9[%c0, %c0_4] : memref<256x128xbf16, #tpu.memory_space<vmem>>, vector<256x128xbf16>
      %c0_5 = arith.constant 0 : index
      %c0_6 = arith.constant 0 : index
      %c0_7 = arith.constant 0 : index
      %16 = vector.load %arg10[%c0_5, %c0_6, %c0_7] : memref<1x128x128xbf16, #tpu.memory_space<vmem>>, vector<1x128x128xbf16>
      %17 = vector.shape_cast %16 : vector<1x128x128xbf16> to vector<128x128xbf16>
      %cst = arith.constant dense<0.000000e+00> : vector<256x128xf32>
      %18 = tpu.matmul %15, %17, %cst {dimension_numbers = #tpu.dot_dimension_numbers<[1], [0], [0], [1], [0, 0, 1, 1], [], []>} : vector<256x128xbf16>, vector<128x128xbf16>, vector<256x128xf32> -> vector<256x128xf32>
      %c0_8 = arith.constant 0 : index
      %c0_9 = arith.constant 0 : index
      %c0_10 = arith.constant 0 : index
      %19 = vector.load %arg11[%c0_8, %c0_9, %c0_10] : memref<1x1x128xf32, #tpu.memory_space<vmem>>, vector<1x1x128xf32>
      %20 = vector.shape_cast %19 : vector<1x1x128xf32> to vector<1x128xf32>
      %21 = vector.broadcast %20 : vector<1x128xf32> to vector<256x128xf32>
      %22 = arith.addf %18, %21 : vector<256x128xf32>
      %23 = arith.truncf %22 : vector<256x128xf32> to vector<256x128xbf16>
      %c0_11 = arith.constant 0 : index
      %c0_12 = arith.constant 0 : index
      %24 = vector.load %arg12[%c0_11, %c0_12] : memref<256x128xbf16, #tpu.memory_space<vmem>>, vector<256x128xbf16>
      tpu.vector_store %arg12[%c0_11, %c0_12], %23 {strides = array<i32>} : memref<256x128xbf16, #tpu.memory_space<vmem>>, vector<256x128xbf16>,
    } else {
    }
    %5 = arith.index_cast %arg1 : i32 to index
    %6 = memref.load %arg7[%5] : memref<8xi32, #tpu.memory_space<smem>>
    %c1_i32_0 = arith.constant 1 : i32
    %7 = arith.cmpi eq, %6, %c1_i32_0 : i32
    %8 = arith.extui %7 : i1 to i32
    %c0_i32_1 = arith.constant 0 : i32
    %9 = arith.cmpi ne, %8, %c0_i32_1 : i32
    scf.if %9 {
      %cst = arith.constant 0.000000e+00 : bf16
      %15 = vector.broadcast %cst : bf16 to vector<256x128xbf16>
      %c0 = arith.constant 0 : index
      %c0_4 = arith.constant 0 : index
      %16 = vector.load %arg12[%c0, %c0_4] : memref<256x128xbf16, #tpu.memory_space<vmem>>, vector<256x128xbf16>
      tpu.vector_store %arg12[%c0, %c0_4], %15 {strides = array<i32>} : memref<256x128xbf16, #tpu.memory_space<vmem>>, vector<256x128xbf16>,
    } else {
    }
    %10 = arith.index_cast %arg1 : i32 to index
    %11 = memref.load %arg8[%10] : memref<8xi32, #tpu.memory_space<smem>>
    %c1_i32_2 = arith.constant 1 : i32
    %12 = arith.cmpi eq, %11, %c1_i32_2 : i32
    %13 = arith.extui %12 : i1 to i32
    %c0_i32_3 = arith.constant 0 : i32
    %14 = arith.cmpi ne, %13, %c0_i32_3 : i32
    scf.if %14 {
      %15 = arith.index_cast %arg1 : i32 to index
      %16 = memref.load %arg3[%15] : memref<8xi32, #tpu.memory_space<smem>>
      %c256_i32 = arith.constant 256 : i32
      %17 = arith.muli %16, %c256_i32 : i32
      %18 = tpu.iota {dimensions = array<i32: 0>} : vector<256x1xi32>
      %19 = vector.broadcast %17 : i32 to vector<256x1xi32>
      %20 = arith.addi %19, %18 : vector<256x1xi32>
      %21 = arith.index_cast %arg1 : i32 to index
      %22 = memref.load %arg4[%21] : memref<8xi32, #tpu.memory_space<smem>>
      %23 = vector.broadcast %22 : i32 to vector<256x1xi32>
      %24 = arith.cmpi sge, %20, %23 : vector<256x1xi32>
      %25 = arith.index_cast %arg1 : i32 to index
      %26 = memref.load %arg5[%25] : memref<8xi32, #tpu.memory_space<smem>>
      %27 = vector.broadcast %26 : i32 to vector<256x1xi32>
      %28 = arith.cmpi slt, %20, %27 : vector<256x1xi32>
      %29 = arith.andi %24, %28 : vector<256x1xi1>
      %c0 = arith.constant 0 : index
      %c0_4 = arith.constant 0 : index
      %30 = vector.load %arg9[%c0, %c0_4] : memref<256x128xbf16, #tpu.memory_space<vmem>>, vector<256x128xbf16>
      %c0_5 = arith.constant 0 : index
      %c0_6 = arith.constant 0 : index
      %c0_7 = arith.constant 0 : index
      %31 = vector.load %arg10[%c0_5, %c0_6, %c0_7] : memref<1x128x128xbf16, #tpu.memory_space<vmem>>, vector<1x128x128xbf16>
      %32 = vector.shape_cast %31 : vector<1x128x128xbf16> to vector<128x128xbf16>
      %cst = arith.constant dense<0.000000e+00> : vector<256x128xf32>
      %33 = tpu.matmul %30, %32, %cst {dimension_numbers = #tpu.dot_dimension_numbers<[1], [0], [0], [1], [0, 0, 1, 1], [], []>} : vector<256x128xbf16>, vector<128x128xbf16>, vector<256x128xf32> -> vector<256x128xf32>
      %c0_8 = arith.constant 0 : index
      %c0_9 = arith.constant 0 : index
      %c0_10 = arith.constant 0 : index
      %34 = vector.load %arg11[%c0_8, %c0_9, %c0_10] : memref<1x1x128xf32, #tpu.memory_space<vmem>>, vector<1x1x128xf32>
      %35 = vector.shape_cast %34 : vector<1x1x128xf32> to vector<1x128xf32>
      %36 = vector.broadcast %35 : vector<1x128xf32> to vector<256x128xf32>
      %37 = arith.addf %33, %36 : vector<256x128xf32>
      %cst_11 = arith.constant 0.000000e+00 : f32
      %38 = vector.shape_cast %29 : vector<256x1xi1> to vector<256x1xi1>
      %39 = vector.broadcast %38 : vector<256x1xi1> to vector<256x128xi1>
      %40 = vector.broadcast %cst_11 : f32 to vector<256x128xf32>
      %41 = arith.select %39, %37, %40 : vector<256x128xi1>, vector<256x128xf32>
      %42 = arith.truncf %41 : vector<256x128xf32> to vector<256x128xbf16>
      %c0_12 = arith.constant 0 : index
      %c0_13 = arith.constant 0 : index
      %43 = vector.load %arg12[%c0_12, %c0_13] : memref<256x128xbf16, #tpu.memory_space<vmem>>, vector<256x128xbf16>
      %44 = arith.addf %43, %42 : vector<256x128xbf16>
      %c0_14 = arith.constant 0 : index
      %c0_15 = arith.constant 0 : index
      %45 = vector.load %arg12[%c0_14, %c0_15] : memref<256x128xbf16, #tpu.memory_space<vmem>>, vector<256x128xbf16>
      tpu.vector_store %arg12[%c0_14, %c0_15], %44 {strides = array<i32>} : memref<256x128xbf16, #tpu.memory_space<vmem>>, vector<256x128xbf16>,
    } else {
    }
    return
  }
  func.func @transform_0(%arg0: i32, %arg1: i32, %arg2: memref<8xi32, #tpu.memory_space<smem>>, %arg3: memref<8xi32, #tpu.memory_space<smem>>, %arg4: memref<8xi32, #tpu.memory_space<smem>>, %arg5: memref<8xi32, #tpu.memory_space<smem>>, %arg6: memref<8xi32, #tpu.memory_space<smem>>, %arg7: memref<8xi32, #tpu.memory_space<smem>>, %arg8: memref<8xi32, #tpu.memory_space<smem>>) -> (i32, i32) {
    %0 = arith.index_cast %arg1 : i32 to index
    %1 = memref.load %arg3[%0] : memref<8xi32, #tpu.memory_space<smem>>
    %c0_i32 = arith.constant 0 : i32
    %c0_i32_0 = arith.constant 0 : i32
    return %1, %c0_i32 : i32, i32
  }
  func.func @transform_1(%arg0: i32, %arg1: i32, %arg2: memref<8xi32, #tpu.memory_space<smem>>, %arg3: memref<8xi32, #tpu.memory_space<smem>>, %arg4: memref<8xi32, #tpu.memory_space<smem>>, %arg5: memref<8xi32, #tpu.memory_space<smem>>, %arg6: memref<8xi32, #tpu.memory_space<smem>>, %arg7: memref<8xi32, #tpu.memory_space<smem>>, %arg8: memref<8xi32, #tpu.memory_space<smem>>) -> (i32, i32, i32) {
    %0 = arith.index_cast %arg1 : i32 to index
    %1 = memref.load %arg2[%0] : memref<8xi32, #tpu.memory_space<smem>>
    %c0_i32 = arith.constant 0 : i32
    %c0_i32_0 = arith.constant 0 : i32
    return %1, %c0_i32, %arg0 : i32, i32, i32
  }
  func.func @transform_2(%arg0: i32, %arg1: i32, %arg2: memref<8xi32, #tpu.memory_space<smem>>, %arg3: memref<8xi32, #tpu.memory_space<smem>>, %arg4: memref<8xi32, #tpu.memory_space<smem>>, %arg5: memref<8xi32, #tpu.memory_space<smem>>, %arg6: memref<8xi32, #tpu.memory_space<smem>>, %arg7: memref<8xi32, #tpu.memory_space<smem>>, %arg8: memref<8xi32, #tpu.memory_space<smem>>) -> (i32, i32, i32) {
    %0 = arith.index_cast %arg1 : i32 to index
    %1 = memref.load %arg2[%0] : memref<8xi32, #tpu.memory_space<smem>>
    %c0_i32 = arith.constant 0 : i32
    %c0_i32_0 = arith.constant 0 : i32
    return %1, %c0_i32, %arg0 : i32, i32, i32
  }
  func.func @transform_3(%arg0: i32, %arg1: i32, %arg2: memref<8xi32, #tpu.memory_space<smem>>, %arg3: memref<8xi32, #tpu.memory_space<smem>>, %arg4: memref<8xi32, #tpu.memory_space<smem>>, %arg5: memref<8xi32, #tpu.memory_space<smem>>, %arg6: memref<8xi32, #tpu.memory_space<smem>>, %arg7: memref<8xi32, #tpu.memory_space<smem>>, %arg8: memref<8xi32, #tpu.memory_space<smem>>) -> (i32, i32) {
    %0 = arith.index_cast %arg1 : i32 to index
    %1 = memref.load %arg3[%0] : memref<8xi32, #tpu.memory_space<smem>>
    %c0_i32 = arith.constant 0 : i32
    return %1, %arg0 : i32, i32
  }
}

</mosaic_0001>

<bundles_post_ra>
// kernel: parallel_experts_forward.1
= control target key start
LH: loop header
LB: loop body
LE: loop exit
PB: predicated region body
PF: predicated region fallthrough
CT: control target
= control target key end

     0   :  { %s2414_s19 = smov [#allocation3]   ;;  %s2415_s20 = smov [#allocation4]   ;;  %s3431_s0 = inlined_call_operand.vmem [shape: s32[8], index: 0, kind: input, shape index: {}]   ;;  %s3432_s7 = inlined_call_operand.vmem [shape: bf16[256,128], index: 7, kind: input, shape index: {}]   ;;  %s3433_s8 = inlined_call_operand.vmem [shape: bf16[8,128,128], index: 8, kind: input, shape index: {}]   ;;  %s3434_s9 = inlined_call_operand.vmem [shape: f32[8,1,128], index: 9, kind: input, shape index: {}]   ;;  %s3435_s10 = inlined_call_operand.hbm [shape: bf16[256,128], index: 10, kind: output, shape index: {}]   ;;  %s3436_s1 = inlined_call_operand.vmem [shape: s32[8], index: 1, kind: input, shape index: {}]   ;;  %s3437_s2 = inlined_call_operand.vmem [shape: s32[8], index: 2, kind: input, shape index: {}]   ;;  %s3438_s3 = inlined_call_operand.vmem [shape: s32[8], index: 3, kind: input, shape index: {}]   ;;  %s3439_s4 = inlined_call_operand.vmem [shape: s32[8], index: 4, kind: input, shape index: {}]   ;;  %s3440_s5 = inlined_call_operand.vmem [shape: s32[8], index: 5, kind: input, shape index: {}]   ;;  %s3441_s6 = inlined_call_operand.vmem [shape: s32[8], index: 6, kind: input, shape index: {}]  }
   0x1   :  { %s16_s15 = sshll.u32 %s3431_s0, 4  ;;  %s21_s18 = sshll.u32 %s3436_s1, 4  ;;  %s17_s15 = int_to_ptr.vmem [resolvable:$true] %s16_s15  ;;  %s22_s18 = int_to_ptr.vmem [resolvable:$true] %s21_s18 }
   0x2   :  { %19 = dma.vmem_to_smem %s17_s15, 16, %s2414_s19, [#allocation2] }
   0x3   :  { %24 = dma.vmem_to_smem %s22_s18, 16, %s2415_s20, [#allocation2] }
   0x4   :  { %s26_s23 = sshll.u32 %s3437_s2, 4  ;;  %s31_s26 = sshll.u32 %s3438_s3, 4  ;;  %s27_s23 = int_to_ptr.vmem [resolvable:$true] %s26_s23  ;;  %s32_s26 = int_to_ptr.vmem [resolvable:$true] %s31_s26 }
   0x5   :  { %s2416_s0 = smov [#allocation5]   ;;  %s2417_s27 = smov [#allocation6]  }
   0x6   :  { %29 = dma.vmem_to_smem %s27_s23, 16, %s2416_s0, [#allocation2] }
   0x7   :  { %34 = dma.vmem_to_smem %s32_s26, 16, %s2417_s27, [#allocation2] }
   0x8   :  { %s36_s29 = sshll.u32 %s3439_s4, 4  ;;  %s41_s12 = sshll.u32 %s3440_s5, 4  ;;  %s37_s29 = int_to_ptr.vmem [resolvable:$true] %s36_s29  ;;  %s42_s12 = int_to_ptr.vmem [resolvable:$true] %s41_s12 }
   0x9   :  { %s2418_s2 = smov [#allocation7]   ;;  %s2419_s13 = smov [#allocation8]  }
   0xa   :  { %39 = dma.vmem_to_smem %s37_s29, 16, %s2418_s2, [#allocation2] }
   0xb   :  { %44 = dma.vmem_to_smem %s42_s12, 16, %s2419_s13, [#allocation2] }
   0xc   :  { %s46_s15 = sshll.u32 %s3441_s6, 4  ;;  %s2420_s16 = smov [#allocation9]   ;;  %s47_s15 = int_to_ptr.vmem [resolvable:$true] %s46_s15 }
   0xd   :  { %49 = dma.vmem_to_smem %s47_s15, 16, %s2420_s16, [#allocation2] }
   0xe   :  { %2384 = dma.done.wait [#allocation2], 112 }
   0xf   :  { %2385 = vsyncadd [#allocation2], 4294967184 }
  0x10   :  { %52 = sfence }
  0x11   :  { %53 = vsyncpa [#allocation11], 0 }
  0x12   :  { %55 = vsyncpa [#allocation11 + $0x1], 0  ;;  %s2500_s4 = smov 0   ;;  %s2502_s5 = smov 0  }
  0x13   :  { %s2504_s17 = smov 0   ;;  %s2506_s18 = smov 0  }
  0x14   :  { %s2508_s19 = smov 0   ;;  %s2510_s20 = smov 0  }
  0x15 LB: > { %s1601_s6 = sadd.s32 4294967295, %s2412_s20   ;;  %s1602_s21 = sadd.s32 4294967294, %s2412_s20   ;;  %s2412_s20 = sphi %s2510_s20, %s61_s20   ;;  %s2408_s19 = sphi %s2508_s19, %s3498_s19   ;;  %s2404_s18 = sphi %s2506_s18, %s3497_s18   ;;  %s2400_s17 = sphi %s2504_s17, %s3496_s17   ;;  %s2396_s5 = sphi %s2502_s5, %s3495_s5   ;;  %s2392_s4 = sphi %s2500_s4, %s3494_s4  }
  0x16   : > { %s70_s22 = sadd.s32 1, %s2408_s19  ;;  %s165_s23 = sld [smem:[#allocation4 + %s2408_s19]] }
  0x17   : > { %p71_p0 = scmp.ge.s32.totalorder %s70_s22, 8  ;;  %p182_p1 = scmp.ne.s32.totalorder %s2400_s17, %s2396_s5 }
  0x18   : > { %p183_p2 = scmp.eq.s32.totalorder %s1601_s6, 7  ;;  %p188_p4 = scmp.ne.s32.totalorder %s2396_s5, %s2392_s4 }
  0x19   : > { %s3500_s22 = smov (%p71_p0, %s70_s22), 0  ;;  %p189_p5 = scmp.eq.s32.totalorder %s1602_s21, 7 }
  0x1a   : > { %p2538_p3 = por %p183_p2, %p182_p1  ;;  %s166_s25 = sld [smem:[#allocation4 + %s3500_s22]] }
  0x1b   : > { %p1605_p6 = scmp.ge.s32.totalorder %s2412_s20, 1  ;;  %p242_p7 = scmp.lt.s32.totalorder %s2412_s20, 9 }
  0x1c   : > { %p2547_p8 = por %p189_p5, %p188_p4  ;;  %s172_s27 = sadd.s32 1, %s2400_s17 }
  0x1d   : > { %p243_p9 = pnand %p1605_p6, %p242_p7 }
  0x1e   : > { %s3442_s28 = sand.u32 (!%p243_p9), 1, %s2396_s5   ;;  %s283_s29 = sld [smem:[#allocation4 + %s2404_s18]] (!%p243_p9) }
  0x1f   : > { %246 = sbr.rel (%p243_p9) target bundleno = 594 (0x252), region = 32  ;;  %s1606_s30 = sshll.u32 (!%p243_p9), %s3442_s28, 7 }
  0x20   : > { %s167_s0 = ssub.s32 %s165_s23, %s166_s25  ;;  %s291_s11 = sld [smem:[#allocation3 + %s2404_s18]] (!%p243_p9) }
  0x21   : > { %p170_p10 = scmp.eq.s32.totalorder %s167_s0, 0  ;;  %s301_s12 = sld [smem:[#allocation3 + %s2404_s18]] (!%p243_p9) }
  0x22   : > { %s312_s2 = sld [smem:[#allocation7 + %s2404_s18]] (!%p243_p9)  ;;  %s2577_s28 = scalar_lea.vmem (!%p243_p9), [#allocation10], %s1606_s30 }
  0x23   : > { %s2553_s1 = scalar_select %p170_p10, %s2400_s17, %s172_s27  }
  0x24   : > { %s1607_s13 = sshll.u32 %s283_s29, 5 }
  0x25   : > { %p285_p11 = scmp.lt.s32.totalorder %s1607_s13, 31 }
  0x26   : > { %p292_p12 = scmp.lt.s32.totalorder %s291_s11, 7 }
  0x27   : > { %p302_p13 = scmp.lt.s32.totalorder %s301_s12, 7  ;;  %s3502_s13 = smov (!%p285_p11, %s1607_s13), 31 }
  0x28   : > { %s3504_s11 = smov (!%p292_p12, %s291_s11), 7  ;;  %s1608_s3 = sshll.u32 %s3502_s13, 2 }
  0x29   : > { %s2565_s16 = scalar_lea.vmem %s3432_s7, %s1608_s3  ;;  %s1812_s6 = sshll.u32 %s3504_s11, 6 }
  0x2a   : > { %s2570_s25 = scalar_lea.vmem %s3433_s8, %s1812_s6  ;;  %s3506_s12 = smov (!%p302_p13, %s301_s12), 7 }
  0x2b   : > { %s2575_s29 = scalar_lea.vmem %s3434_s9, %s3506_s12  ;;  %p1611_p0 = scmp.ne.s32.totalorder %s312_s2, 1 }
  0x2d   : > { %316 = sbr.rel (%p1611_p0) target bundleno = 277 (0x115), region = 36 }
  0x32   : > { %v1836_v0 = vld [vmem:[%s2570_s25 + $0x38] sm:$0xff]  ;;  %v1835_v1 = vld [vmem:[%s2570_s25 + $0x30] sm:$0xff]  ;;  %v1834_v2 = vld [vmem:[%s2570_s25 + $0x28] sm:$0xff] }
  0x33   : > { %513 = vmatpush.bf16.msra.mxu0 %v1836_v0  ;;  %2131 = vmatpush.bf16.msra.mxu1 %v1836_v0  ;;  %v1833_v3 = vld [vmem:[%s2570_s25 + $0x20] sm:$0xff]  ;;  %v1832_v4 = vld [vmem:[%s2570_s25 + $0x18] sm:$0xff]  ;;  %v1831_v5 = vld [vmem:[%s2570_s25 + $0x10] sm:$0xff] }
  0x34   : > { %2132 = vmatpush.bf16.msra.mxu2 %v1836_v0  ;;  %2133 = vmatpush.bf16.msra.mxu3 %v1836_v0  ;;  %v1830_v6 = vld [vmem:[%s2570_s25 + $0x8] sm:$0xff]  ;;  %v1829_v7 = vld [vmem:[%s2570_s25] sm:$0xff]  ;;  %v1815_v16 = vld [vmem:[%s2565_s16 + $0x10] sm:$0xff] }
  0x35   : > { %v1813_v8 = vld [vmem:[%s2565_s16] sm:$0xff]  ;;  %v1814_v12 = vld [vmem:[%s2565_s16 + $0x8] sm:$0xff]  ;;  %v1819_v17 = vld [vmem:[%s2565_s16 + $0x30] sm:$0xff] }
  0x36   : > { %v1817_v9 = vld [vmem:[%s2565_s16 + $0x20] sm:$0xff]  ;;  %v1818_v13 = vld [vmem:[%s2565_s16 + $0x28] sm:$0xff]  ;;  %v1823_v18 = vld [vmem:[%s2565_s16 + $0x50] sm:$0xff] }
  0x37   : > { %514 = vmatpush.bf16.msra.mxu0 %v1835_v1  ;;  %2134 = vmatpush.bf16.msra.mxu1 %v1835_v1  ;;  %v1821_v10 = vld [vmem:[%s2565_s16 + $0x40] sm:$0xff]  ;;  %v1822_v14 = vld [vmem:[%s2565_s16 + $0x48] sm:$0xff]  ;;  %v1827_v19 = vld [vmem:[%s2565_s16 + $0x70] sm:$0xff] }
  0x38   : > { %2135 = vmatpush.bf16.msra.mxu2 %v1835_v1  ;;  %2136 = vmatpush.bf16.msra.mxu3 %v1835_v1  ;;  %v1825_v11 = vld [vmem:[%s2565_s16 + $0x60] sm:$0xff]  ;;  %v1826_v15 = vld [vmem:[%s2565_s16 + $0x68] sm:$0xff]  ;;  %v1816_v20 = vld [vmem:[%s2565_s16 + $0x18] sm:$0xff] }
  0x39   : > { %v1820_v21 = vld [vmem:[%s2565_s16 + $0x38] sm:$0xff]  ;;  %v2604_v26 = vld [vmem:[%s2575_s29] ss:$0 sm:$0xff] }
  0x3a   : > { %v1824_v22 = vld [vmem:[%s2565_s16 + $0x58] sm:$0xff] }
  0x3b   : > { %515 = vmatpush.bf16.msra.mxu0 %v1834_v2  ;;  %2137 = vmatpush.bf16.msra.mxu1 %v1834_v2  ;;  %v1828_v23 = vld [vmem:[%s2565_s16 + $0x78] sm:$0xff] }
  0x3c   : > { %2138 = vmatpush.bf16.msra.mxu2 %v1834_v2  ;;  %2139 = vmatpush.bf16.msra.mxu3 %v1834_v2 }
  0x3f   : > { %516 = vmatpush.bf16.msra.mxu0 %v1833_v3  ;;  %2140 = vmatpush.bf16.msra.mxu1 %v1833_v3 }
  0x40   : > { %2141 = vmatpush.bf16.msra.mxu2 %v1833_v3  ;;  %2142 = vmatpush.bf16.msra.mxu3 %v1833_v3 }
  0x43   : > { %517 = vmatpush.bf16.msra.mxu0 %v1832_v4  ;;  %2143 = vmatpush.bf16.msra.mxu1 %v1832_v4 }
  0x44   : > { %2144 = vmatpush.bf16.msra.mxu2 %v1832_v4  ;;  %2145 = vmatpush.bf16.msra.mxu3 %v1832_v4 }
  0x47   : > { %518 = vmatpush.bf16.msra.mxu0 %v1831_v5  ;;  %2146 = vmatpush.bf16.msra.mxu1 %v1831_v5 }
  0x48   : > { %2147 = vmatpush.bf16.msra.mxu2 %v1831_v5  ;;  %2148 = vmatpush.bf16.msra.mxu3 %v1831_v5 }
  0x4b   : > { %519 = vmatpush.bf16.msra.mxu0 %v1830_v6  ;;  %2149 = vmatpush.bf16.msra.mxu1 %v1830_v6 }
  0x4c   : > { %2150 = vmatpush.bf16.msra.mxu2 %v1830_v6  ;;  %2151 = vmatpush.bf16.msra.mxu3 %v1830_v6 }
  0x4f   : > { %520 = vmatpush.bf16.msra.mxu0 %v1829_v7  ;;  %2152 = vmatpush.bf16.msra.mxu1 %v1829_v7 }
  0x50   : > { %2153 = vmatpush.bf16.msra.mxu2 %v1829_v7  ;;  %2154 = vmatpush.bf16.msra.mxu3 %v1829_v7 }
  0x52   : > { %521 = vmatmul.bf16.vlgmr.msra.gmra.mxu0 %v1813_v8  ;;  %541 = vmatmul.bf16.vlgmr.msra.gmra.mxu1 %v1817_v9 }
  0x53   : > { %561 = vmatmul.bf16.vlgmr.msra.gmra.mxu2 %v1821_v10  ;;  %581 = vmatmul.bf16.vlgmr.msra.gmra.mxu3 %v1825_v11 }
  0x62   : > { %526 = vmatmul.bf16.gmra.mxu0 %v1814_v12  ;;  %546 = vmatmul.bf16.gmra.mxu1 %v1818_v13 }
  0x63   : > { %566 = vmatmul.bf16.gmra.mxu2 %v1822_v14  ;;  %586 = vmatmul.bf16.gmra.mxu3 %v1826_v15 }
  0x72   : > { %531 = vmatmul.bf16.gmra.mxu0 %v1815_v16  ;;  %551 = vmatmul.bf16.gmra.mxu1 %v1819_v17 }
  0x73   : > { %571 = vmatmul.bf16.gmra.mxu2 %v1823_v18  ;;  %591 = vmatmul.bf16.gmra.mxu3 %v1827_v19 }
  0x82   : > { %536 = vmatmul.bf16.gmra.mxu0 %v1816_v20  ;;  %556 = vmatmul.bf16.gmra.mxu1 %v1820_v21 }
  0x83   : > { %576 = vmatmul.bf16.gmra.mxu2 %v1824_v22  ;;  %596 = vmatmul.bf16.gmra.mxu3 %v1828_v23 }
  0xcf   : > { %v522_v24 = vpop.f32.mrf.mxu0  ;;  %v542_v25 = vpop.f32.mrf.mxu1 }
  0xd0   : > { %v523_v31 = vadd.f32 %v2604_v26, %v522_v24  ;;  %v543_v32 = vadd.f32 %v2604_v26, %v542_v25 }
  0xd6   : > { %v562_v27 = vpop.f32.mrf.mxu2  ;;  %v582_v28 = vpop.f32.mrf.mxu3 }
  0xd7   : > { %v524_v29 = vpop.f32.mrf.mxu0  ;;  %v544_v30 = vpop.f32.mrf.mxu1  ;;  %v563_v39 = vadd.f32 %v2604_v26, %v562_v27  ;;  %v583_v40 = vadd.f32 %v2604_v26, %v582_v28 }
  0xd8   : > { %v525_v33 = vadd.f32 %v2604_v26, %v524_v29  ;;  %v545_v34 = vadd.f32 %v2604_v26, %v544_v30 }
  0xda   : > { %v1865_v35 = vpack.c.bf16 %v525_v33, %v523_v31  ;;  %v1885_v36 = vpack.c.bf16 %v545_v34, %v543_v32 }
  0xdc   : > { %1866 = vst [vmem:[%s2577_s28] sm:$0xff] %v1865_v35  }
  0xdd   : > { %2089 = vst [vmem:[%s2577_s28 + $0x20] sm:$0xff] %v1885_v36  }
  0xde   : > { %v564_v37 = vpop.f32.mrf.mxu2  ;;  %v584_v38 = vpop.f32.mrf.mxu3 }
  0xdf   : > { %v565_v41 = vadd.f32 %v2604_v26, %v564_v37  ;;  %v585_v42 = vadd.f32 %v2604_v26, %v584_v38  ;;  %v527_v43 = vpop.f32.mrf.mxu0  ;;  %v547_v44 = vpop.f32.mrf.mxu1 }
  0xe0   : > { %v528_v51 = vadd.f32 %v2604_v26, %v527_v43  ;;  %v548_v52 = vadd.f32 %v2604_v26, %v547_v44 }
  0xe1   : > { %v1905_v45 = vpack.c.bf16 %v565_v41, %v563_v39  ;;  %v1925_v46 = vpack.c.bf16 %v585_v42, %v583_v40 }
  0xe3   : > { %2093 = vst [vmem:[%s2577_s28 + $0x40] sm:$0xff] %v1905_v45  }
  0xe4   : > { %2097 = vst [vmem:[%s2577_s28 + $0x60] sm:$0xff] %v1925_v46  }
  0xe6   : > { %v567_v47 = vpop.f32.mrf.mxu2  ;;  %v587_v48 = vpop.f32.mrf.mxu3 }
  0xe7   : > { %v529_v49 = vpop.f32.mrf.mxu0  ;;  %v549_v50 = vpop.f32.mrf.mxu1  ;;  %v568_v59 = vadd.f32 %v2604_v26, %v567_v47  ;;  %v588_v60 = vadd.f32 %v2604_v26, %v587_v48 }
  0xe8   : > { %v530_v53 = vadd.f32 %v2604_v26, %v529_v49  ;;  %v550_v54 = vadd.f32 %v2604_v26, %v549_v50 }
  0xea   : > { %v1870_v55 = vpack.c.bf16 %v530_v53, %v528_v51  ;;  %v1890_v56 = vpack.c.bf16 %v550_v54, %v548_v52 }
  0xec   : > { %2086 = vst [vmem:[%s2577_s28 + $0x8] sm:$0xff] %v1870_v55  }
  0xed   : > { %2090 = vst [vmem:[%s2577_s28 + $0x28] sm:$0xff] %v1890_v56  }
  0xee   : > { %v569_v57 = vpop.f32.mrf.mxu2  ;;  %v589_v58 = vpop.f32.mrf.mxu3 }
  0xef   : > { %v570_v61 = vadd.f32 %v2604_v26, %v569_v57  ;;  %v590_v62 = vadd.f32 %v2604_v26, %v589_v58  ;;  %v532_v63 = vpop.f32.mrf.mxu0  ;;  %v552_v0 = vpop.f32.mrf.mxu1 }
  0xf0   : > { %v533_v7 = vadd.f32 %v2604_v26, %v532_v63  ;;  %v553_v8 = vadd.f32 %v2604_v26, %v552_v0 }
  0xf1   : > { %v1910_v1 = vpack.c.bf16 %v570_v61, %v568_v59  ;;  %v1930_v2 = vpack.c.bf16 %v590_v62, %v588_v60 }
  0xf3   : > { %2094 = vst [vmem:[%s2577_s28 + $0x48] sm:$0xff] %v1910_v1  }
  0xf4   : > { %2098 = vst [vmem:[%s2577_s28 + $0x68] sm:$0xff] %v1930_v2  }
  0xf6   : > { %v572_v3 = vpop.f32.mrf.mxu2  ;;  %v592_v4 = vpop.f32.mrf.mxu3 }
  0xf7   : > { %v534_v5 = vpop.f32.mrf.mxu0  ;;  %v554_v6 = vpop.f32.mrf.mxu1  ;;  %v573_v15 = vadd.f32 %v2604_v26, %v572_v3  ;;  %v593_v16 = vadd.f32 %v2604_v26, %v592_v4 }
  0xf8   : > { %v535_v9 = vadd.f32 %v2604_v26, %v534_v5  ;;  %v555_v10 = vadd.f32 %v2604_v26, %v554_v6 }
  0xfa   : > { %v1875_v11 = vpack.c.bf16 %v535_v9, %v533_v7  ;;  %v1895_v12 = vpack.c.bf16 %v555_v10, %v553_v8 }
  0xfc   : > { %2087 = vst [vmem:[%s2577_s28 + $0x10] sm:$0xff] %v1875_v11  }
  0xfd   : > { %2091 = vst [vmem:[%s2577_s28 + $0x30] sm:$0xff] %v1895_v12  }
  0xfe   : > { %v574_v13 = vpop.f32.mrf.mxu2  ;;  %v594_v14 = vpop.f32.mrf.mxu3 }
  0xff   : > { %v575_v17 = vadd.f32 %v2604_v26, %v574_v13  ;;  %v595_v18 = vadd.f32 %v2604_v26, %v594_v14  ;;  %v537_v19 = vpop.f32.mrf.mxu0  ;;  %v557_v20 = vpop.f32.mrf.mxu1 }
 0x100   : > { %v538_v28 = vadd.f32 %v2604_v26, %v537_v19  ;;  %v558_v29 = vadd.f32 %v2604_v26, %v557_v20 }
 0x101   : > { %v1915_v21 = vpack.c.bf16 %v575_v17, %v573_v15  ;;  %v1935_v22 = vpack.c.bf16 %v595_v18, %v593_v16 }
 0x103   : > { %2095 = vst [vmem:[%s2577_s28 + $0x50] sm:$0xff] %v1915_v21  }
 0x104   : > { %2099 = vst [vmem:[%s2577_s28 + $0x70] sm:$0xff] %v1935_v22  }
 0x106   : > { %v577_v23 = vpop.f32.mrf.mxu2  ;;  %v597_v24 = vpop.f32.mrf.mxu3 }
 0x107   : > { %v539_v25 = vpop.f32.mrf.mxu0  ;;  %v559_v27 = vpop.f32.mrf.mxu1  ;;  %v578_v36 = vadd.f32 %v2604_v26, %v577_v23  ;;  %v598_v37 = vadd.f32 %v2604_v26, %v597_v24 }
 0x108   : > { %v540_v30 = vadd.f32 %v2604_v26, %v539_v25  ;;  %v560_v31 = vadd.f32 %v2604_v26, %v559_v27 }
 0x10a   : > { %v1880_v32 = vpack.c.bf16 %v540_v30, %v538_v28  ;;  %v1900_v33 = vpack.c.bf16 %v560_v31, %v558_v29 }
 0x10c   : > { %2088 = vst [vmem:[%s2577_s28 + $0x18] sm:$0xff] %v1880_v32  }
 0x10d   : > { %2092 = vst [vmem:[%s2577_s28 + $0x38] sm:$0xff] %v1900_v33  }
 0x10e   : > { %v579_v34 = vpop.f32.mrf.mxu2  ;;  %v599_v35 = vpop.f32.mrf.mxu3 }
 0x10f   : > { %v580_v38 = vadd.f32 %v2604_v26, %v579_v34  ;;  %v600_v39 = vadd.f32 %v2604_v26, %v599_v35 }
 0x111   : > { %v1920_v40 = vpack.c.bf16 %v580_v38, %v578_v36  ;;  %v1940_v41 = vpack.c.bf16 %v600_v39, %v598_v37 }
 0x113   : > { %2096 = vst [vmem:[%s2577_s28 + $0x58] sm:$0xff] %v1920_v40  }
 0x114   : > { %2100 = vst [vmem:[%s2577_s28 + $0x78] sm:$0xff] %v1940_v41  }
 0x115 PF: > { %s666_s30 = sld [smem:[#allocation8 + %s2404_s18]] }
 0x11b   : > { %p1708_p1 = scmp.ne.s32.totalorder %s666_s30, 1 }
 0x11d   : > { %670 = sbr.rel (%p1708_p1) target bundleno = 323 (0x143), region = 40 }
 0x122   : > { %v2421_v42 = vmov 0  }
 0x123   : > { %671 = vst [vmem:[%s2577_s28] sm:$0xf] %v2421_v42 }
 0x124   : > { %672 = vst [vmem:[%s2577_s28 + $0x4] sm:$0xf] %v2421_v42 }
 0x125   : > { %673 = vst [vmem:[%s2577_s28 + $0x8] sm:$0xf] %v2421_v42 }
 0x126   : > { %674 = vst [vmem:[%s2577_s28 + $0xc] sm:$0xf] %v2421_v42 }
 0x127   : > { %675 = vst [vmem:[%s2577_s28 + $0x10] sm:$0xf] %v2421_v42 }
 0x128   : > { %676 = vst [vmem:[%s2577_s28 + $0x14] sm:$0xf] %v2421_v42 }
 0x129   : > { %677 = vst [vmem:[%s2577_s28 + $0x18] sm:$0xf] %v2421_v42 }
 0x12a   : > { %678 = vst [vmem:[%s2577_s28 + $0x1c] sm:$0xf] %v2421_v42 }
 0x12b   : > { %679 = vst [vmem:[%s2577_s28 + $0x20] sm:$0xf] %v2421_v42 }
 0x12c   : > { %680 = vst [vmem:[%s2577_s28 + $0x24] sm:$0xf] %v2421_v42 }
 0x12d   : > { %681 = vst [vmem:[%s2577_s28 + $0x28] sm:$0xf] %v2421_v42 }
 0x12e   : > { %682 = vst [vmem:[%s2577_s28 + $0x2c] sm:$0xf] %v2421_v42 }
 0x12f   : > { %683 = vst [vmem:[%s2577_s28 + $0x30] sm:$0xf] %v2421_v42 }
 0x130   : > { %684 = vst [vmem:[%s2577_s28 + $0x34] sm:$0xf] %v2421_v42 }
 0x131   : > { %685 = vst [vmem:[%s2577_s28 + $0x38] sm:$0xf] %v2421_v42 }
 0x132   : > { %686 = vst [vmem:[%s2577_s28 + $0x3c] sm:$0xf] %v2421_v42 }
 0x133   : > { %687 = vst [vmem:[%s2577_s28 + $0x40] sm:$0xf] %v2421_v42 }
 0x134   : > { %688 = vst [vmem:[%s2577_s28 + $0x44] sm:$0xf] %v2421_v42 }
 0x135   : > { %689 = vst [vmem:[%s2577_s28 + $0x48] sm:$0xf] %v2421_v42 }
 0x136   : > { %690 = vst [vmem:[%s2577_s28 + $0x4c] sm:$0xf] %v2421_v42 }
 0x137   : > { %691 = vst [vmem:[%s2577_s28 + $0x50] sm:$0xf] %v2421_v42 }
 0x138   : > { %692 = vst [vmem:[%s2577_s28 + $0x54] sm:$0xf] %v2421_v42 }
 0x139   : > { %693 = vst [vmem:[%s2577_s28 + $0x58] sm:$0xf] %v2421_v42 }
 0x13a   : > { %694 = vst [vmem:[%s2577_s28 + $0x5c] sm:$0xf] %v2421_v42 }
 0x13b   : > { %695 = vst [vmem:[%s2577_s28 + $0x60] sm:$0xf] %v2421_v42 }
 0x13c   : > { %696 = vst [vmem:[%s2577_s28 + $0x64] sm:$0xf] %v2421_v42 }
 0x13d   : > { %697 = vst [vmem:[%s2577_s28 + $0x68] sm:$0xf] %v2421_v42 }
 0x13e   : > { %698 = vst [vmem:[%s2577_s28 + $0x6c] sm:$0xf] %v2421_v42 }
 0x13f   : > { %699 = vst [vmem:[%s2577_s28 + $0x70] sm:$0xf] %v2421_v42 }
 0x140   : > { %700 = vst [vmem:[%s2577_s28 + $0x74] sm:$0xf] %v2421_v42 }
 0x141   : > { %701 = vst [vmem:[%s2577_s28 + $0x78] sm:$0xf] %v2421_v42 }
 0x142   : > { %702 = vst [vmem:[%s2577_s28 + $0x7c] sm:$0xf] %v2421_v42 }
 0x143 PF: > { %s703_s11 = sld [smem:[#allocation9 + %s2404_s18]] }
 0x149   : > { %p1709_p2 = scmp.ne.s32.totalorder %s703_s11, 1 }
 0x14a   : > { %s708_s12 = sld [smem:[#allocation4 + %s2404_s18]] (!%p1709_p2) }
 0x14b   : > { %707 = sbr.rel (%p1709_p2) target bundleno = 570 (0x23a), region = 44  ;;  %s776_s2 = sld [smem:[#allocation5 + %s2404_s18]] (!%p1709_p2) }
 0x14c   : > { %s810_s13 = sld [smem:[#allocation6 + %s2404_s18]] (!%p1709_p2) }
 0x150   : > { %v1860_v26 = vld [vmem:[%s2570_s25 + $0x38] sm:$0xff]  ;;  %v1859_v43 = vld [vmem:[%s2570_s25 + $0x30] sm:$0xff]  ;;  %v1858_v44 = vld [vmem:[%s2570_s25 + $0x28] sm:$0xff]  ;;  %v710_v2 = vlaneseq  ;;  %s1710_s3 = sshll.u32 %s708_s12, 8 }
 0x151   : > { %1072 = vmatpush.bf16.msra.mxu0 %v1860_v26  ;;  %2155 = vmatpush.bf16.msra.mxu1 %v1860_v26  ;;  %v1857_v45 = vld [vmem:[%s2570_s25 + $0x20] sm:$0xff]  ;;  %v1856_v46 = vld [vmem:[%s2570_s25 + $0x18] sm:$0xff]  ;;  %v1855_v47 = vld [vmem:[%s2570_s25 + $0x10] sm:$0xff]  ;;  %v2717_v4 = vstv %s1710_s3 }
 0x152   : > { %2156 = vmatpush.bf16.msra.mxu2 %v1860_v26  ;;  %2157 = vmatpush.bf16.msra.mxu3 %v1860_v26  ;;  %v1854_v48 = vld [vmem:[%s2570_s25 + $0x8] sm:$0xff]  ;;  %v1853_v49 = vld [vmem:[%s2570_s25] sm:$0xff]  ;;  %v1839_v58 = vld [vmem:[%s2565_s16 + $0x10] sm:$0xff]  ;;  %v2714_v3 = vshrl.u32 %v710_v2, 7  ;;  %v2725_v10 = vstv %s776_s2 }
 0x153   : > { %v1837_v50 = vld [vmem:[%s2565_s16] sm:$0xff]  ;;  %v1838_v54 = vld [vmem:[%s2565_s16 + $0x8] sm:$0xff]  ;;  %v1843_v59 = vld [vmem:[%s2565_s16 + $0x30] sm:$0xff]  ;;  %v2727_v11 = vstv %s810_s13 }
 0x154   : > { %v1841_v51 = vld [vmem:[%s2565_s16 + $0x20] sm:$0xff]  ;;  %v1842_v55 = vld [vmem:[%s2565_s16 + $0x28] sm:$0xff]  ;;  %v1847_v60 = vld [vmem:[%s2565_s16 + $0x50] sm:$0xff]  ;;  %v719_v5 = vadd.s32 64, %v2714_v3  ;;  %v727_v6 = vadd.s32 128, %v2714_v3  ;;  %v735_v7 = vadd.s32 192, %v2714_v3  ;;  %v744_v8 = vadd.s32 %v2717_v4, %v2714_v3 }
 0x155   : > { %1073 = vmatpush.bf16.msra.mxu0 %v1859_v43  ;;  %2158 = vmatpush.bf16.msra.mxu1 %v1859_v43  ;;  %v1845_v52 = vld [vmem:[%s2565_s16 + $0x40] sm:$0xff]  ;;  %v1846_v56 = vld [vmem:[%s2565_s16 + $0x48] sm:$0xff]  ;;  %v1851_v61 = vld [vmem:[%s2565_s16 + $0x70] sm:$0xff]  ;;  %v712_v9 = vadd.s32 8, %v2714_v3  ;;  %v720_v13 = vadd.s32 72, %v2714_v3  ;;  %v728_v19 = vadd.s32 136, %v2714_v3 }
 0x156   : > { %2159 = vmatpush.bf16.msra.mxu2 %v1859_v43  ;;  %2160 = vmatpush.bf16.msra.mxu3 %v1859_v43  ;;  %v1849_v53 = vld [vmem:[%s2565_s16 + $0x60] sm:$0xff]  ;;  %v1850_v57 = vld [vmem:[%s2565_s16 + $0x68] sm:$0xff]  ;;  %v1840_v62 = vld [vmem:[%s2565_s16 + $0x18] sm:$0xff]  ;;  %v752_v12 = vadd.s32 %v2717_v4, %v719_v5  ;;  %v760_v15 = vadd.s32 %v2717_v4, %v727_v6  ;;  %v2736_v16 = vadd.s32 %v2717_v4, %v735_v7  ;;  %v736_v23 = vadd.s32 200, %v2714_v3 }
 0x157   : > { %v1844_v63 = vld [vmem:[%s2565_s16 + $0x38] sm:$0xff]  ;;  %v2732_v14 = vld [vmem:[%s2577_s28] sm:$0xff]   ;;  %vm778_vm0 = vcmp.ge.s32.totalorder %v744_v8, %v2725_v10  ;;  %vm812_vm1 = vcmp.lt.s32.totalorder %v744_v8, %v2727_v11  ;;  %v2744_v18 = vadd.s32 %v2717_v4, %v712_v9  ;;  %v2753_v22 = vadd.s32 %v2717_v4, %v720_v13 }
 0x158   : > { %v1848_v0 = vld [vmem:[%s2565_s16 + $0x58] sm:$0xff]  ;;  %v2741_v17 = vld [vmem:[%s2577_s28 + $0x20] sm:$0xff]   ;;  %v1944_v20 = vunpack.c.l.bf16 %v2732_v14  ;;  %vm786_vm2 = vcmp.ge.s32.totalorder %v752_v12, %v2725_v10  ;;  %vm820_vm3 = vcmp.lt.s32.totalorder %v752_v12, %v2727_v11  ;;  %vm794_vm4 = vcmp.ge.s32.totalorder %v760_v15, %v2725_v10  ;;  %vm2791_vm11 = vmand %vm778_vm0, %vm812_vm1 }
 0x159   : > { %1074 = vmatpush.bf16.msra.mxu0 %v1858_v44  ;;  %2161 = vmatpush.bf16.msra.mxu1 %v1858_v44  ;;  %v1852_v1 = vld [vmem:[%s2565_s16 + $0x78] sm:$0xff]  ;;  %v2750_v21 = vld [vmem:[%s2577_s28 + $0x40] sm:$0xff]   ;;  %vm828_vm5 = vcmp.lt.s32.totalorder %v760_v15, %v2727_v11  ;;  %v713_v24 = vadd.s32 16, %v2714_v3  ;;  %v1960_v27 = vunpack.c.l.bf16 %v2741_v17  ;;  %vm802_vm6 = vcmp.ge.s32.totalorder %v2736_v16, %v2725_v10  ;;  %vm2807_vm13 = vmand %vm786_vm2, %vm820_vm3 }
 0x15a   : > { %2162 = vmatpush.bf16.msra.mxu2 %v1858_v44  ;;  %2163 = vmatpush.bf16.msra.mxu3 %v1858_v44  ;;  %v2761_v25 = vld [vmem:[%s2575_s29] ss:$0 sm:$0xff]  ;;  %vm836_vm7 = vcmp.lt.s32.totalorder %v2736_v16, %v2727_v11  ;;  %v721_v29 = vadd.s32 80, %v2714_v3  ;;  %v1976_v30 = vunpack.c.l.bf16 %v2750_v21  ;;  %vm779_vm8 = vcmp.ge.s32.totalorder %v2744_v18, %v2725_v10  ;;  %vm2858_vm0 = vmand %vm794_vm4, %vm828_vm5 }
 0x15b   : > { %v2769_v28 = vld [vmem:[%s2577_s28 + $0x60] sm:$0xff]   ;;  %vm813_vm9 = vcmp.lt.s32.totalorder %v2744_v18, %v2727_v11  ;;  %v2778_v31 = vadd.s32 %v2717_v4, %v728_v19  ;;  %vm787_vm10 = vcmp.ge.s32.totalorder %v2753_v22, %v2725_v10  ;;  %v2783_v32 = vadd.s32 %v2717_v4, %v736_v23  ;;  %vm2876_vm4 = vmand %vm802_vm6, %vm836_vm7 }
 0x15c   : > { %v729_v33 = vadd.s32 144, %v2714_v3  ;;  %v737_v34 = vadd.s32 208, %v2714_v3  ;;  %v1992_v38 = vunpack.c.l.bf16 %v2769_v28  ;;  %v1945_v39 = vunpack.c.h.bf16 %v2732_v14  ;;  %vm2892_vm5 = vmand %vm779_vm8, %vm813_vm9 }
 0x15d   : > { %1075 = vmatpush.bf16.msra.mxu0 %v1857_v45  ;;  %2164 = vmatpush.bf16.msra.mxu1 %v1857_v45  ;;  %vm821_vm12 = vcmp.lt.s32.totalorder %v2753_v22, %v2727_v11  ;;  %v2800_v40 = vadd.s32 %v2717_v4, %v713_v24  ;;  %v2813_v43 = vadd.s32 %v2717_v4, %v721_v29  ;;  %v714_v44 = vadd.s32 24, %v2714_v3 }
 0x15e   : > { %2165 = vmatpush.bf16.msra.mxu2 %v1857_v45  ;;  %2166 = vmatpush.bf16.msra.mxu3 %v1857_v45  ;;  %v1961_v45 = vunpack.c.h.bf16 %v2741_v17  ;;  %vm795_vm14 = vcmp.ge.s32.totalorder %v2778_v31, %v2725_v10  ;;  %vm829_vm15 = vcmp.lt.s32.totalorder %v2778_v31, %v2727_v11  ;;  %vm837_vm1 = vcmp.lt.s32.totalorder %v2783_v32, %v2727_v11  ;;  %vm2906_vm6 = vmand %vm787_vm10, %vm821_vm12  ;;  %v3044_v31 = vld [vmem:[%s2577_s28 + $0x70] sm:$0xff]  }
 0x15f   : > { %vm780_vm2 = vcmp.ge.s32.totalorder %v2800_v40, %v2725_v10  ;;  %vm814_vm3 = vcmp.lt.s32.totalorder %v2800_v40, %v2727_v11  ;;  %v738_v23 = vadd.s32 216, %v2714_v3 }
 0x161   : > { %1076 = vmatpush.bf16.msra.mxu0 %v1856_v46  ;;  %2167 = vmatpush.bf16.msra.mxu1 %v1856_v46 }
 0x162   : > { %2168 = vmatpush.bf16.msra.mxu2 %v1856_v46  ;;  %2169 = vmatpush.bf16.msra.mxu3 %v1856_v46  ;;  %v722_v46 = vadd.s32 88, %v2714_v3 }
 0x165   : > { %1077 = vmatpush.bf16.msra.mxu0 %v1855_v47  ;;  %2170 = vmatpush.bf16.msra.mxu1 %v1855_v47 }
 0x166   : > { %2171 = vmatpush.bf16.msra.mxu2 %v1855_v47  ;;  %2172 = vmatpush.bf16.msra.mxu3 %v1855_v47  ;;  %v1977_v47 = vunpack.c.h.bf16 %v2750_v21 }
 0x169   : > { %1078 = vmatpush.bf16.msra.mxu0 %v1854_v48  ;;  %2173 = vmatpush.bf16.msra.mxu1 %v1854_v48 }
 0x16a   : > { %2174 = vmatpush.bf16.msra.mxu2 %v1854_v48  ;;  %2175 = vmatpush.bf16.msra.mxu3 %v1854_v48  ;;  %v1993_v48 = vunpack.c.h.bf16 %v2769_v28 }
 0x16d   : > { %1079 = vmatpush.bf16.msra.mxu0 %v1853_v49  ;;  %2176 = vmatpush.bf16.msra.mxu1 %v1853_v49 }
 0x16e   : > { %2177 = vmatpush.bf16.msra.mxu2 %v1853_v49  ;;  %2178 = vmatpush.bf16.msra.mxu3 %v1853_v49  ;;  %v2829_v49 = vld [vmem:[%s2577_s28 + $0x8] sm:$0xff]  }
 0x16f   : > { %v1949_v9 = vunpack.c.h.bf16 %v2829_v49 }
 0x170   : > { %1080 = vmatmul.bf16.vlgmr.msra.gmra.mxu0 %v1837_v50  ;;  %1100 = vmatmul.bf16.vlgmr.msra.gmra.mxu1 %v1841_v51  ;;  %v2832_v50 = vld [vmem:[%s2577_s28 + $0x28] sm:$0xff]   ;;  %v2835_v51 = vadd.s32 %v2717_v4, %v729_v33 }
 0x171   : > { %1120 = vmatmul.bf16.vlgmr.msra.gmra.mxu2 %v1845_v52  ;;  %1140 = vmatmul.bf16.vlgmr.msra.gmra.mxu3 %v1849_v53  ;;  %v2838_v52 = vld [vmem:[%s2577_s28 + $0x48] sm:$0xff]   ;;  %v2841_v53 = vadd.s32 %v2717_v4, %v737_v34  ;;  %v1965_v19 = vunpack.c.h.bf16 %v2832_v50  ;;  %v715_v34 = vadd.s32 32, %v2714_v3 }
 0x172   : > { %vm796_vm7 = vcmp.ge.s32.totalorder %v2835_v51, %v2725_v10  ;;  %vm830_vm8 = vcmp.lt.s32.totalorder %v2835_v51, %v2727_v11 }
 0x173   : > { %vm804_vm9 = vcmp.ge.s32.totalorder %v2841_v53, %v2725_v10  ;;  %vm838_vm10 = vcmp.lt.s32.totalorder %v2841_v53, %v2727_v11 }
 0x180   : > { %1085 = vmatmul.bf16.gmra.mxu0 %v1838_v54  ;;  %1105 = vmatmul.bf16.gmra.mxu1 %v1842_v55 }
 0x181   : > { %1125 = vmatmul.bf16.gmra.mxu2 %v1846_v56  ;;  %1145 = vmatmul.bf16.gmra.mxu3 %v1850_v57  ;;  %v2852_v56 = vld [vmem:[%s2577_s28 + $0x68] sm:$0xff]   ;;  %v2942_v57 = vadd.s32 %v2717_v4, %v738_v23 }
 0x182   : > { %v1996_v8 = vunpack.c.l.bf16 %v2852_v56 }
 0x190   : > { %1090 = vmatmul.bf16.gmra.mxu0 %v1839_v58  ;;  %1110 = vmatmul.bf16.gmra.mxu1 %v1843_v59  ;;  %v2867_v58 = vadd.s32 %v2717_v4, %v714_v44  ;;  %v730_v59 = vadd.s32 152, %v2714_v3 }
 0x191   : > { %1130 = vmatmul.bf16.gmra.mxu2 %v1847_v60  ;;  %1150 = vmatmul.bf16.gmra.mxu3 %v1851_v61  ;;  %v1948_v61 = vunpack.c.l.bf16 %v2829_v49 }
 0x192   : > { %v2915_v33 = vadd.s32 %v2717_v4, %v730_v59  ;;  %vm781_vm12 = vcmp.ge.s32.totalorder %v2867_v58, %v2725_v10 }
 0x1a0   : > { %1095 = vmatmul.bf16.gmra.mxu0 %v1840_v62  ;;  %1115 = vmatmul.bf16.gmra.mxu1 %v1844_v63  ;;  %v1964_v62 = vunpack.c.l.bf16 %v2832_v50  ;;  %v1980_v63 = vunpack.c.l.bf16 %v2838_v52 }
 0x1a1   : > { %1135 = vmatmul.bf16.gmra.mxu2 %v1848_v0  ;;  %1155 = vmatmul.bf16.gmra.mxu3 %v1852_v1  ;;  %v2884_v0 = vadd.s32 %v2717_v4, %v722_v46 }
 0x1ed   : > { %v1081_v36 = vpop.f32.mrf.mxu0  ;;  %v1101_v37 = vpop.f32.mrf.mxu1 }
 0x1ee   : > { %v1082_v41 = vadd.f32 %v2761_v25, %v1081_v36  ;;  %v1102_v26 = vadd.f32 %v2761_v25, %v1101_v37  ;;  %v723_v36 = vadd.s32 96, %v2714_v3  ;;  %v731_v37 = vadd.s32 160, %v2714_v3 }
 0x1f0   : > { %v1225_v54 = vsel %vm2791_vm11, %v1082_v41, 0.0  ;;  %v1233_v55 = vsel %vm2807_vm13, %v1102_v26, 0.0  ;;  %vm788_vm11 = vcmp.ge.s32.totalorder %v2813_v43, %v2725_v10  ;;  %vm822_vm13 = vcmp.lt.s32.totalorder %v2813_v43, %v2727_v11 }
 0x1f1   : > { %v1257_v1 = vpack.c.bf16 %v1225_v54, %v1225_v54  ;;  %v1265_v2 = vpack.c.bf16 %v1233_v55, %v1233_v55  ;;  %v1981_v55 = vunpack.c.h.bf16 %v2838_v52 }
 0x1f3   : > { %v1353_v41 = vunpack.c.l.bf16 %v1257_v1  ;;  %v1361_v42 = vunpack.c.l.bf16 %v1265_v2  ;;  %v1997_v2 = vunpack.c.h.bf16 %v2852_v56 }
 0x1f4   : > { %v1121_v5 = vpop.f32.mrf.mxu2  ;;  %v1141_v6 = vpop.f32.mrf.mxu3 }
 0x1f5   : > { %v1122_v12 = vadd.f32 %v2761_v25, %v1121_v5  ;;  %v1142_v13 = vadd.f32 %v2761_v25, %v1141_v6  ;;  %v1083_v15 = vpop.f32.mrf.mxu0  ;;  %v1103_v18 = vpop.f32.mrf.mxu1  ;;  %v739_v5 = vadd.s32 224, %v2714_v3  ;;  %v1393_v16 = vadd.f32 %v1960_v27, %v1361_v42 }
 0x1f6   : > { %v1084_v24 = vadd.f32 %v2761_v25, %v1083_v15  ;;  %v1104_v29 = vadd.f32 %v2761_v25, %v1103_v18  ;;  %v1385_v15 = vadd.f32 %v1944_v20, %v1353_v41  ;;  %v716_v20 = vadd.s32 40, %v2714_v3 }
 0x1f7   : > { %v1241_v22 = vsel %vm2858_vm0, %v1122_v12, 0.0  ;;  %v1249_v35 = vsel %vm2876_vm4, %v1142_v13, 0.0  ;;  %vm815_vm0 = vcmp.lt.s32.totalorder %v2867_v58, %v2727_v11  ;;  %vm2950_vm4 = vmand %vm795_vm14, %vm829_vm15  ;;  %vm3459_vm14 = vcmp.ge.s32.totalorder %v2783_v32, %v2725_v10 }
 0x1f8   : > { %v1226_v26 = vsel %vm2892_vm5, %v1084_v24, 0.0  ;;  %v1234_v44 = vsel %vm2906_vm6, %v1104_v29, 0.0  ;;  %v1273_v59 = vpack.c.bf16 %v1241_v22, %v1241_v22  ;;  %v1281_v60 = vpack.c.bf16 %v1249_v35, %v1249_v35  ;;  %vm2966_vm15 = vmand %vm3459_vm14, %vm837_vm1 }
 0x1f9   : > { %v1258_v46 = vpack.c.bf16 %v1226_v26, %v1226_v26  ;;  %v1266_v54 = vpack.c.bf16 %v1234_v44, %v1234_v44  ;;  %vm789_vm5 = vcmp.ge.s32.totalorder %v2884_v0, %v2725_v10  ;;  %vm823_vm6 = vcmp.lt.s32.totalorder %v2884_v0, %v2727_v11  ;;  %vm2986_vm1 = vmand %vm780_vm2, %vm814_vm3  ;;  %v3024_v44 = vld [vmem:[%s2577_s28 + $0x30] sm:$0xff]  }
 0x1fa   : > { %v2971_v12 = vadd.s32 %v2717_v4, %v715_v34  ;;  %v2974_v13 = vadd.s32 %v2717_v4, %v723_v36  ;;  %v2991_v24 = vadd.s32 %v2717_v4, %v731_v37  ;;  %vm3006_vm2 = vmand %vm788_vm11, %vm822_vm13  ;;  %v1369_v17 = vunpack.c.l.bf16 %v1273_v59  ;;  %v3013_v37 = vld [vmem:[%s2577_s28 + $0x10] sm:$0xff]  }
 0x1fb   : > { %v1354_v6 = vunpack.c.l.bf16 %v1258_v46  ;;  %v1362_v7 = vunpack.c.l.bf16 %v1266_v54  ;;  %vm797_vm3 = vcmp.ge.s32.totalorder %v2915_v33, %v2725_v10  ;;  %vm831_vm11 = vcmp.lt.s32.totalorder %v2915_v33, %v2727_v11  ;;  %v3027_v46 = vld [vmem:[%s2577_s28 + $0x50] sm:$0xff]  }
 0x1fc   : > { %v1123_v18 = vpop.f32.mrf.mxu2  ;;  %v1143_v23 = vpop.f32.mrf.mxu3  ;;  %vm805_vm13 = vcmp.ge.s32.totalorder %v2942_v57, %v2725_v10  ;;  %vm824_vm14 = vcmp.lt.s32.totalorder %v2974_v13, %v2727_v11  ;;  %v1984_v32 = vunpack.c.l.bf16 %v3027_v46  ;;  %v3096_v21 = vadd.s32 %v2717_v4, %v716_v20 }
 0x1fd   : > { %v1386_v27 = vadd.f32 %v1945_v39, %v1354_v6  ;;  %v1394_v29 = vadd.f32 %v1961_v45, %v1362_v7  ;;  %v1124_v34 = vadd.f32 %v2761_v25, %v1123_v18  ;;  %v1144_v40 = vadd.f32 %v2761_v25, %v1143_v23  ;;  %v1086_v22 = vpop.f32.mrf.mxu0  ;;  %v1106_v14 = vpop.f32.mrf.mxu1 }
 0x1fe   : > { %v1377_v39 = vunpack.c.l.bf16 %v1281_v60  ;;  %v1087_v45 = vadd.f32 %v2761_v25, %v1086_v22  ;;  %v1107_v36 = vadd.f32 %v2761_v25, %v1106_v14  ;;  %v1952_v7 = vunpack.c.l.bf16 %v3013_v37 }
 0x1ff   : > { %v2009_v41 = vpack.c.bf16 %v1386_v27, %v1385_v15  ;;  %v2029_v42 = vpack.c.bf16 %v1394_v29, %v1393_v16  ;;  %v1242_v26 = vsel %vm2950_vm4, %v1124_v34, 0.0  ;;  %v1250_v43 = vsel %vm2966_vm15, %v1144_v40, 0.0 }
 0x200   : > { %v1274_v54 = vpack.c.bf16 %v1242_v26, %v1242_v26  ;;  %v1282_v59 = vpack.c.bf16 %v1250_v43, %v1250_v43  ;;  %v1227_v60 = vsel %vm2986_vm1, %v1087_v45, 0.0  ;;  %v1235_v1 = vsel %vm3006_vm2, %v1107_v36, 0.0  ;;  %vm3053_vm1 = vmand %vm796_vm7, %vm830_vm8 }
 0x201   : > { %vm839_vm4 = vcmp.lt.s32.totalorder %v2942_v57, %v2727_v11  ;;  %2010 = vst [vmem:[%s2577_s28] sm:$0xff] %v2009_v41   ;;  %v1259_v6 = vpack.c.bf16 %v1227_v60, %v1227_v60  ;;  %vm816_vm15 = vcmp.lt.s32.totalorder %v2971_v12, %v2727_v11  ;;  %vm790_vm2 = vcmp.ge.s32.totalorder %v2974_v13, %v2725_v10  ;;  %vm3073_vm7 = vmand %vm804_vm9, %vm838_vm10 }
 0x202   : > { %2119 = vst [vmem:[%s2577_s28 + $0x20] sm:$0xff] %v2029_v42   ;;  %v1370_v15 = vunpack.c.l.bf16 %v1274_v54  ;;  %v1378_v16 = vunpack.c.l.bf16 %v1282_v59  ;;  %v1968_v23 = vunpack.c.l.bf16 %v3024_v44  ;;  %v1401_v27 = vadd.f32 %v1976_v30, %v1369_v17  ;;  %vm3090_vm8 = vmand %vm781_vm12, %vm815_vm0 }
 0x203   : > { %v1409_v51 = vadd.f32 %v1992_v38, %v1377_v39  ;;  %v1267_v29 = vpack.c.bf16 %v1235_v1, %v1235_v1  ;;  %v3078_v40 = vadd.s32 %v2717_v4, %v739_v5  ;;  %v2000_v5 = vunpack.c.l.bf16 %v3044_v31  ;;  %vm3106_vm9 = vmand %vm789_vm5, %vm823_vm6 }
 0x204   : > { %v1402_v30 = vadd.f32 %v1977_v47, %v1370_v15  ;;  %v1410_v38 = vadd.f32 %v1993_v48, %v1378_v16  ;;  %v1126_v22 = vpop.f32.mrf.mxu2  ;;  %v1146_v35 = vpop.f32.mrf.mxu3  ;;  %v1355_v47 = vunpack.c.l.bf16 %v1259_v6  ;;  %v724_v20 = vadd.s32 104, %v2714_v3 }
 0x205   : > { %v1127_v28 = vadd.f32 %v2761_v25, %v1126_v22  ;;  %v1147_v48 = vadd.f32 %v2761_v25, %v1146_v35  ;;  %v1088_v14 = vpop.f32.mrf.mxu0  ;;  %v1108_v17 = vpop.f32.mrf.mxu1  ;;  %v1363_v42 = vunpack.c.l.bf16 %v1267_v29  ;;  %vm798_vm10 = vcmp.ge.s32.totalorder %v2991_v24, %v2725_v10 }
 0x206   : > { %v2049_v39 = vpack.c.bf16 %v1402_v30, %v1401_v27  ;;  %v2069_v45 = vpack.c.bf16 %v1410_v38, %v1409_v51  ;;  %v1089_v36 = vadd.f32 %v2761_v25, %v1088_v14  ;;  %v1109_v41 = vadd.f32 %v2761_v25, %v1108_v17 }
 0x207   : > { %v1243_v26 = vsel %vm3053_vm1, %v1127_v28, 0.0  ;;  %v1251_v0 = vsel %vm3073_vm7, %v1147_v48, 0.0  ;;  %vm832_vm12 = vcmp.lt.s32.totalorder %v2991_v24, %v2727_v11  ;;  %v732_v43 = vadd.s32 168, %v2714_v3  ;;  %vm3142_vm7 = vmand %vm797_vm3, %vm831_vm11 }
 0x208   : > { %2123 = vst [vmem:[%s2577_s28 + $0x40] sm:$0xff] %v2049_v39   ;;  %v1275_v54 = vpack.c.bf16 %v1243_v26, %v1243_v26  ;;  %v1283_v59 = vpack.c.bf16 %v1251_v0, %v1251_v0  ;;  %v1228_v60 = vsel %vm3090_vm8, %v1089_v36, 0.0  ;;  %v1236_v1 = vsel %vm3106_vm9, %v1109_v41, 0.0  ;;  %vm3158_vm3 = vmand %vm805_vm13, %vm839_vm4 }
 0x209   : > { %vm806_vm0 = vcmp.ge.s32.totalorder %v3078_v40, %v2725_v10  ;;  %vm840_vm5 = vcmp.lt.s32.totalorder %v3078_v40, %v2727_v11  ;;  %2127 = vst [vmem:[%s2577_s28 + $0x60] sm:$0xff] %v2069_v45   ;;  %v1260_v6 = vpack.c.bf16 %v1228_v60, %v1228_v60  ;;  %v1268_v15 = vpack.c.bf16 %v1236_v1, %v1236_v1  ;;  %vm856_vm13 = vmand %vm790_vm2, %vm824_vm14 }
 0x20a   : > { %vm783_vm6 = vcmp.ge.s32.totalorder %v3096_v21, %v2725_v10  ;;  %vm817_vm1 = vcmp.lt.s32.totalorder %v3096_v21, %v2727_v11  ;;  %v1953_v18 = vunpack.c.h.bf16 %v3013_v37  ;;  %v757_v27 = vadd.s32 %v2717_v4, %v724_v20 }
 0x20b   : > { %v1969_v51 = vunpack.c.h.bf16 %v3024_v44  ;;  %v740_v29 = vadd.s32 232, %v2714_v3  ;;  %v1387_v34 = vadd.f32 %v1948_v61, %v1355_v47  ;;  %v1356_v30 = vunpack.c.l.bf16 %v1260_v6 }
 0x20c   : > { %v1364_v38 = vunpack.c.l.bf16 %v1268_v15  ;;  %v1985_v22 = vunpack.c.h.bf16 %v3027_v46  ;;  %v1395_v35 = vadd.f32 %v1964_v62, %v1363_v42  ;;  %v1371_v53 = vunpack.c.l.bf16 %v1275_v54  ;;  %v1128_v61 = vpop.f32.mrf.mxu2  ;;  %v1148_v47 = vpop.f32.mrf.mxu3 }
 0x20d   : > { %v1379_v28 = vunpack.c.l.bf16 %v1283_v59  ;;  %vm3478_vm11 = vcmp.ge.s32.totalorder %v2971_v12, %v2725_v10  ;;  %v3176_v48 = vadd.s32 %v2717_v4, %v732_v43  ;;  %v1388_v62 = vadd.f32 %v1949_v9, %v1356_v30  ;;  %v1091_v20 = vpop.f32.mrf.mxu0  ;;  %v1111_v12 = vpop.f32.mrf.mxu1 }
 0x20e   : > { %vm3171_vm8 = vmand %vm3478_vm11, %vm816_vm15  ;;  %v1396_v14 = vadd.f32 %v1965_v19, %v1364_v38  ;;  %v1129_v58 = vadd.f32 %v2761_v25, %v1128_v61  ;;  %v1149_v17 = vadd.f32 %v2761_v25, %v1148_v47  ;;  %v1092_v49 = vadd.f32 %v2761_v25, %v1091_v20 }
 0x20f   : > { %v1112_v9 = vadd.f32 %v2761_v25, %v1111_v12  ;;  %v3193_v50 = vadd.s32 %v2717_v4, %v740_v29  ;;  %v717_v19 = vadd.s32 48, %v2714_v3  ;;  %v2014_v39 = vpack.c.bf16 %v1388_v62, %v1387_v34  ;;  %vm3213_vm15 = vmand %vm798_vm10, %vm832_vm12 }
 0x210   : > { %v2034_v45 = vpack.c.bf16 %v1396_v14, %v1395_v35  ;;  %v1244_v36 = vsel %vm3142_vm7, %v1129_v58, 0.0  ;;  %v1252_v13 = vsel %vm3158_vm3, %v1149_v17, 0.0  ;;  %v1229_v26 = vsel %vm3171_vm8, %v1092_v49, 0.0  ;;  %vm3231_vm10 = vmand %vm806_vm0, %vm840_vm5 }
 0x211   : > { %v1276_v41 = vpack.c.bf16 %v1244_v36, %v1244_v36  ;;  %v1284_v42 = vpack.c.bf16 %v1252_v13, %v1252_v13  ;;  %v1237_v0 = vsel %vm856_vm13, %v1112_v9, 0.0  ;;  %2116 = vst [vmem:[%s2577_s28 + $0x8] sm:$0xff] %v2014_v39   ;;  %v1261_v43 = vpack.c.bf16 %v1229_v26, %v1229_v26  ;;  %vm3246_vm12 = vmand %vm783_vm6, %vm817_vm1 }
 0x212   : > { %vm791_vm4 = vcmp.ge.s32.totalorder %v757_v27, %v2725_v10  ;;  %vm825_vm14 = vcmp.lt.s32.totalorder %v757_v27, %v2727_v11  ;;  %v2001_v54 = vunpack.c.h.bf16 %v3044_v31  ;;  %2120 = vst [vmem:[%s2577_s28 + $0x28] sm:$0xff] %v2034_v45   ;;  %vm799_vm2 = vcmp.ge.s32.totalorder %v3176_v48, %v2725_v10 }
 0x213   : > { %v1372_v59 = vunpack.c.l.bf16 %v1276_v41  ;;  %v1380_v60 = vunpack.c.l.bf16 %v1284_v42  ;;  %vm833_vm9 = vcmp.lt.s32.totalorder %v3176_v48, %v2727_v11  ;;  %v1403_v6 = vadd.f32 %v1980_v63, %v1371_v53  ;;  %vm857_vm5 = vmand %vm791_vm4, %vm825_vm14 }
 0x214   : > { %v1411_v15 = vadd.f32 %v1996_v8, %v1379_v28  ;;  %v1269_v16 = vpack.c.bf16 %v1237_v0, %v1237_v0  ;;  %v725_v29 = vadd.s32 112, %v2714_v3  ;;  %v1131_v8 = vpop.f32.mrf.mxu2  ;;  %v1151_v30 = vpop.f32.mrf.mxu3  ;;  %vm807_vm0 = vcmp.ge.s32.totalorder %v3193_v50, %v2725_v10  ;;  %vm3285_vm3 = vmand %vm799_vm2, %vm833_vm9 }
 0x215   : > { %v1404_v34 = vadd.f32 %v1981_v55, %v1372_v59  ;;  %v1412_v63 = vadd.f32 %v1997_v2, %v1380_v60  ;;  %v750_v52 = vadd.s32 %v2717_v4, %v717_v19  ;;  %v1357_v56 = vunpack.c.l.bf16 %v1261_v43  ;;  %v1093_v38 = vpop.f32.mrf.mxu0  ;;  %v1113_v21 = vpop.f32.mrf.mxu1 }
 0x216   : > { %v1132_v55 = vadd.f32 %v2761_v25, %v1131_v8  ;;  %v1152_v2 = vadd.f32 %v2761_v25, %v1151_v30  ;;  %vm841_vm6 = vcmp.lt.s32.totalorder %v3193_v50, %v2727_v11  ;;  %v1094_v53 = vadd.f32 %v2761_v25, %v1093_v38 }
 0x217   : > { %v2054_v33 = vpack.c.bf16 %v1404_v34, %v1403_v6  ;;  %v2074_v35 = vpack.c.bf16 %v1412_v63, %v1411_v15  ;;  %v1114_v28 = vadd.f32 %v2761_v25, %v1113_v21  ;;  %v1365_v61 = vunpack.c.l.bf16 %v1269_v16  ;;  %vm3299_vm13 = vmand %vm807_vm0, %vm841_vm6 }
 0x218   : > { %v1245_v47 = vsel %vm3213_vm15, %v1132_v55, 0.0  ;;  %v1253_v57 = vsel %vm3231_vm10, %v1152_v2, 0.0  ;;  %v758_v27 = vadd.s32 %v2717_v4, %v725_v29  ;;  %v1230_v14 = vsel %vm3246_vm12, %v1094_v53, 0.0  ;;  %v2103_v55 = vld [vmem:[%s2577_s28 + $0x18] sm:$0xff]  }
 0x219   : > { %2124 = vst [vmem:[%s2577_s28 + $0x48] sm:$0xff] %v2054_v33   ;;  %v1277_v62 = vpack.c.bf16 %v1245_v47, %v1245_v47  ;;  %v1238_v58 = vsel %vm857_vm5, %v1114_v28, 0.0  ;;  %v733_v17 = vadd.s32 176, %v2714_v3  ;;  %v1262_v20 = vpack.c.bf16 %v1230_v14, %v1230_v14 }
 0x21a   : > { %2128 = vst [vmem:[%s2577_s28 + $0x68] sm:$0xff] %v2074_v35   ;;  %v1270_v12 = vpack.c.bf16 %v1238_v58, %v1238_v58  ;;  %vm784_vm1 = vcmp.ge.s32.totalorder %v750_v52, %v2725_v10  ;;  %vm818_vm7 = vcmp.lt.s32.totalorder %v750_v52, %v2727_v11  ;;  %v1389_v49 = vadd.f32 %v1952_v7, %v1357_v56  ;;  %v2107_v35 = vld [vmem:[%s2577_s28 + $0x38] sm:$0xff]  }
 0x21b   : > { %v1285_v9 = vpack.c.bf16 %v1253_v57, %v1253_v57  ;;  %v741_v19 = vadd.s32 240, %v2714_v3  ;;  %v718_v39 = vadd.s32 56, %v2714_v3  ;;  %v1358_v45 = vunpack.c.l.bf16 %v1262_v20  ;;  %vm850_vm4 = vmand %vm784_vm1, %vm818_vm7 }
 0x21c   : > { %v1366_v36 = vunpack.c.l.bf16 %v1270_v12  ;;  %vm792_vm11 = vcmp.ge.s32.totalorder %v758_v27, %v2725_v10  ;;  %vm826_vm8 = vcmp.lt.s32.totalorder %v758_v27, %v2727_v11  ;;  %v1397_v7 = vadd.f32 %v1968_v23, %v1365_v61  ;;  %v1133_v42 = vpop.f32.mrf.mxu2  ;;  %v1153_v26 = vpop.f32.mrf.mxu3 }
 0x21d   : > { %v1373_v41 = vunpack.c.l.bf16 %v1277_v62  ;;  %v766_v0 = vadd.s32 %v2717_v4, %v733_v17  ;;  %v751_v43 = vadd.s32 %v2717_v4, %v718_v39  ;;  %v1390_v23 = vadd.f32 %v1953_v18, %v1358_v45  ;;  %v1096_v50 = vpop.f32.mrf.mxu0  ;;  %v1116_v6 = vpop.f32.mrf.mxu1  ;;  %vm858_vm14 = vmand %vm792_vm11, %vm826_vm8 }
 0x21e   : > { %v1398_v59 = vadd.f32 %v1969_v51, %v1366_v36  ;;  %v1134_v60 = vadd.f32 %v2761_v25, %v1133_v42  ;;  %v1154_v1 = vadd.f32 %v2761_v25, %v1153_v26  ;;  %v1381_v15 = vunpack.c.l.bf16 %v1285_v9 }
 0x21f   : > { %v1097_v16 = vadd.f32 %v2761_v25, %v1096_v50  ;;  %v1117_v37 = vadd.f32 %v2761_v25, %v1116_v6  ;;  %v774_v44 = vadd.s32 %v2717_v4, %v741_v19  ;;  %v2019_v18 = vpack.c.bf16 %v1390_v23, %v1389_v49 }
 0x220   : > { %v2039_v51 = vpack.c.bf16 %v1398_v59, %v1397_v7  ;;  %v1246_v24 = vsel %vm3285_vm3, %v1134_v60, 0.0  ;;  %v1254_v29 = vsel %vm3299_vm13, %v1154_v1, 0.0  ;;  %vm800_vm15 = vcmp.ge.s32.totalorder %v766_v0, %v2725_v10  ;;  %v2111_v59 = vld [vmem:[%s2577_s28 + $0x58] sm:$0xff]  }
 0x221   : > { %v1278_v34 = vpack.c.bf16 %v1246_v24, %v1246_v24  ;;  %v1286_v63 = vpack.c.bf16 %v1254_v29, %v1254_v29  ;;  %v1231_v8 = vsel %vm850_vm4, %v1097_v16, 0.0  ;;  %v1405_v30 = vadd.f32 %v1984_v32, %v1373_v41  ;;  %2117 = vst [vmem:[%s2577_s28 + $0x10] sm:$0xff] %v2019_v18  }
 0x222   : > { %v1239_v40 = vsel %vm858_vm14, %v1117_v37, 0.0  ;;  %vm834_vm2 = vcmp.lt.s32.totalorder %v766_v0, %v2727_v11  ;;  %vm785_vm9 = vcmp.ge.s32.totalorder %v751_v43, %v2725_v10  ;;  %2121 = vst [vmem:[%s2577_s28 + $0x30] sm:$0xff] %v2039_v51   ;;  %vm819_vm10 = vcmp.lt.s32.totalorder %v751_v43, %v2727_v11  ;;  %v2115_v37 = vld [vmem:[%s2577_s28 + $0x78] sm:$0xff]  }
 0x223   : > { %v1374_v52 = vunpack.c.l.bf16 %v1278_v34  ;;  %v1382_v56 = vunpack.c.l.bf16 %v1286_v63  ;;  %v726_v2 = vadd.s32 120, %v2714_v3  ;;  %v1413_v38 = vadd.f32 %v2000_v5, %v1381_v15  ;;  %vm3349_vm5 = vmand %vm800_vm15, %vm834_vm2 }
 0x224   : > { %v1263_v21 = vpack.c.bf16 %v1231_v8, %v1231_v8  ;;  %vm808_vm12 = vcmp.ge.s32.totalorder %v774_v44, %v2725_v10  ;;  %vm842_vm0 = vcmp.lt.s32.totalorder %v774_v44, %v2727_v11  ;;  %v1136_v5 = vpop.f32.mrf.mxu2  ;;  %v1156_v28 = vpop.f32.mrf.mxu3  ;;  %v734_v47 = vadd.s32 184, %v2714_v3  ;;  %vm851_vm6 = vmand %vm785_vm9, %vm819_vm10 }
 0x225   : > { %v1406_v32 = vadd.f32 %v1985_v22, %v1374_v52  ;;  %v1414_v33 = vadd.f32 %v2001_v54, %v1382_v56  ;;  %v759_v61 = vadd.s32 %v2717_v4, %v726_v2  ;;  %v1956_v46 = vunpack.c.l.bf16 %v2103_v55  ;;  %v1098_v57 = vpop.f32.mrf.mxu0  ;;  %v1118_v27 = vpop.f32.mrf.mxu1  ;;  %vm874_vm1 = vmand %vm808_vm12, %vm842_vm0 }
 0x226   : > { %v1271_v22 = vpack.c.bf16 %v1239_v40, %v1239_v40  ;;  %v1137_v31 = vadd.f32 %v2761_v25, %v1136_v5  ;;  %v1157_v54 = vadd.f32 %v2761_v25, %v1156_v28  ;;  %v1099_v58 = vadd.f32 %v2761_v25, %v1098_v57 }
 0x227   : > { %v2059_v62 = vpack.c.bf16 %v1406_v32, %v1405_v30  ;;  %v2079_v14 = vpack.c.bf16 %v1414_v33, %v1413_v38  ;;  %vm793_vm7 = vcmp.ge.s32.totalorder %v759_v61, %v2725_v10  ;;  %v1972_v17 = vunpack.c.l.bf16 %v2107_v35 }
 0x228   : > { %v1957_v20 = vunpack.c.h.bf16 %v2103_v55  ;;  %vm827_vm3 = vcmp.lt.s32.totalorder %v759_v61, %v2727_v11  ;;  %v1119_v12 = vadd.f32 %v2761_v25, %v1118_v27  ;;  %v1359_v49 = vunpack.c.l.bf16 %v1263_v21 }
 0x229   : > { %2125 = vst [vmem:[%s2577_s28 + $0x50] sm:$0xff] %v2059_v62   ;;  %v1247_v9 = vsel %vm3349_vm5, %v1137_v31, 0.0  ;;  %v1232_v19 = vsel %vm851_vm6, %v1099_v58, 0.0  ;;  %vm859_vm11 = vmand %vm793_vm7, %vm827_vm3  ;;  %v767_v39 = vadd.s32 %v2717_v4, %v734_v47  ;;  %v1255_v45 = vsel %vm874_vm1, %v1157_v54, 0.0 }
 0x22a   : > { %2129 = vst [vmem:[%s2577_s28 + $0x70] sm:$0xff] %v2079_v14   ;;  %v1264_v36 = vpack.c.bf16 %v1232_v19, %v1232_v19  ;;  %v1240_v13 = vsel %vm859_vm11, %v1119_v12, 0.0  ;;  %v742_v7 = vadd.s32 248, %v2714_v3  ;;  %v1367_v41 = vunpack.c.l.bf16 %v1271_v22 }
 0x22b   : > { %v1272_v42 = vpack.c.bf16 %v1240_v13, %v1240_v13  ;;  %v1973_v48 = vunpack.c.h.bf16 %v2107_v35  ;;  %vm801_vm8 = vcmp.ge.s32.totalorder %v767_v39, %v2725_v10  ;;  %vm835_vm13 = vcmp.lt.s32.totalorder %v767_v39, %v2727_v11 }
 0x22c   : > { %v1360_v26 = vunpack.c.l.bf16 %v1264_v36  ;;  %v775_v0 = vadd.s32 %v2717_v4, %v742_v7  ;;  %v1391_v43 = vadd.f32 %v1956_v46, %v1359_v49  ;;  %v1279_v23 = vpack.c.bf16 %v1247_v9, %v1247_v9  ;;  %vm867_vm4 = vmand %vm801_vm8, %vm835_vm13  ;;  %v1138_v50 = vpop.f32.mrf.mxu2  ;;  %v1158_v6 = vpop.f32.mrf.mxu3 }
 0x22d   : > { %v1287_v60 = vpack.c.bf16 %v1255_v45, %v1255_v45  ;;  %v1368_v1 = vunpack.c.l.bf16 %v1272_v42  ;;  %v1139_v15 = vadd.f32 %v2761_v25, %v1138_v50  ;;  %v1399_v16 = vadd.f32 %v1972_v17, %v1367_v41 }
 0x22e   : > { %v1392_v3 = vadd.f32 %v1957_v20, %v1360_v26  ;;  %vm809_vm14 = vcmp.ge.s32.totalorder %v775_v0, %v2725_v10  ;;  %vm843_vm15 = vcmp.lt.s32.totalorder %v775_v0, %v2727_v11  ;;  %v1159_v4 = vadd.f32 %v2761_v25, %v1158_v6 }
 0x22f   : > { %v1400_v44 = vadd.f32 %v1973_v48, %v1368_v1  ;;  %vm875_vm2 = vmand %vm809_vm14, %vm843_vm15  ;;  %v1988_v18 = vunpack.c.l.bf16 %v2111_v59  ;;  %v1248_v24 = vsel %vm867_vm4, %v1139_v15, 0.0  ;;  %v1989_v29 = vunpack.c.h.bf16 %v2111_v59 }
 0x230   : > { %v2024_v51 = vpack.c.bf16 %v1392_v3, %v1391_v43  ;;  %v1375_v34 = vunpack.c.l.bf16 %v1279_v23  ;;  %v1280_v8 = vpack.c.bf16 %v1248_v24, %v1248_v24  ;;  %v1256_v30 = vsel %vm875_vm2, %v1159_v4, 0.0 }
 0x231   : > { %v2044_v63 = vpack.c.bf16 %v1400_v44, %v1399_v16  ;;  %v2004_v10 = vunpack.c.l.bf16 %v2115_v37  ;;  %v1383_v11 = vunpack.c.l.bf16 %v1287_v60  ;;  %v1288_v40 = vpack.c.bf16 %v1256_v30, %v1256_v30 }
 0x232   : > { %2118 = vst [vmem:[%s2577_s28 + $0x18] sm:$0xff] %v2024_v51   ;;  %v2005_v52 = vunpack.c.h.bf16 %v2115_v37  ;;  %v1376_v56 = vunpack.c.l.bf16 %v1280_v8  ;;  %v1407_v2 = vadd.f32 %v1988_v18, %v1375_v34 }
 0x233   : > { %2122 = vst [vmem:[%s2577_s28 + $0x38] sm:$0xff] %v2044_v63   ;;  %v1384_v55 = vunpack.c.l.bf16 %v1288_v40  ;;  %v1415_v38 = vadd.f32 %v2004_v10, %v1383_v11 }
 0x234   : > { %v1408_v25 = vadd.f32 %v1989_v29, %v1376_v56 }
 0x235   : > { %v1416_v21 = vadd.f32 %v2005_v52, %v1384_v55 }
 0x236   : > { %v2064_v32 = vpack.c.bf16 %v1408_v25, %v1407_v2 }
 0x237   : > { %v2084_v33 = vpack.c.bf16 %v1416_v21, %v1415_v38 }
 0x238   : > { %2126 = vst [vmem:[%s2577_s28 + $0x58] sm:$0xff] %v2064_v32  }
 0x239   : > { %2130 = vst [vmem:[%s2577_s28 + $0x78] sm:$0xff] %v2084_v33  }
 0x23a PF: > { %s2179_s14 = scalar_select %p2538_p3, [#allocation4], [#allocation12] }
 0x23b   : > { %s3508_s18 = smov (!%p2538_p3, %s2404_s18), 0  ;;  %s1496_s16 = sshll.u32 %s2577_s28, 4  ;;  %s1497_s16 = int_to_ptr.vmem [resolvable:$true] %s1496_s16 }
 0x23c   : > { %s1489_s15 = sld [smem:[%s2179_s14 + %s3508_s18]]  ;;  %s3493_s27 = sand.u32 1, %s2396_s5  }
 0x23d   : > { %s1482_s29 = scalar_lea.sflag [#allocation11], %s3493_s27  ;;  %s2352_s28 = scalar_lea.hbm %s3435_s10, 128 }
 0x242   : > { %s1861_s6 = sshll.u32 %s1489_s15, 7 }
 0x243   : > { %s1495_s25 = scalar_lea.hbm %s3435_s10, %s1861_s6 }
 0x244   : > { %s1498_s0 = sshll.u32 %s1495_s25, 4  ;;  %s1499_s0 = int_to_ptr.hbm [resolvable:$true] %s1498_s0 }
 0x245   : > { %s2346_s30 = sshra.s32 %s1499_s0, 4  ;;  %s2347_s30 = int_to_ptr.hbm [resolvable:$true] %s2346_s30 }
 0x246   : > { %s2348_s11 = scalar_lea.hbm %s2347_s30, 128  ;;  %p2353_p7 = scmp.lt.s32.totalorder %s2347_s30, %s3435_s10 }
 0x247   : > { %p2349_p4 = scmp.ne.s32.totalorder %s2347_s30, %s2348_s11  ;;  %p2354_p9 = scmp.lt.s32.totalorder %s2352_s28, %s2348_s11 }
 0x249   : > { %p2350_p5 = pnand %p2349_p4, %p2538_p3  ;;  %p2355_p10 = por %p2354_p9, %p2353_p7 }
 0x24b   : > { %p2351_p6 = pneg %p2350_p5 }
 0x24d   : > { %p2356_p11 = pnand %p2355_p10, %p2351_p6 }
 0x24f   : > { %2359 = shalt.err (!%p2356_p11)
}
 0x250   : > { %s2422_s3 = smov 64   ;;  %s2423_s14 = smov 4  }
 0x251   : > { %2181 = dma.vmem_to_hbm [thread:$0]  (%p2538_p3), %s1497_s16, 2048, %s1499_s0, %s1482_s29, %s2422_s3, %s2422_s3, %s2423_s14  }
 0x252 PF: > { %p2187_p12 = scmp.ge.s32.totalorder %s2412_s20, 2  ;;  %s1513_s15 = sand.u32 1, %s2392_s4  }
 0x253   : > { %s1514_s6 = scalar_lea.sflag [#allocation11], %s1513_s15 }
 0x254   : > { %p2184_p13 = pnand %p2187_p12, %p2547_p8 }
 0x256   : > { %p2185_p0 = pneg %p2184_p13 }
 0x258   : > { %2387 = dma.done.wait (%p2185_p0), %s1514_s6, 2048  }
 0x259   : > { %2389 = vsyncadd (%p2185_p0), %s1514_s6, 4294965248  ;;  %s61_s20 = sadd.s32 1, %s2412_s20   ;;  %s3494_s4 = smov %s2396_s5 }
 0x25a   : > { %p58_p1 = scmp.ge.s32.totalorder %s61_s20, 10   ;;  %s3495_s5 = smov %s2400_s17 }
 0x25b   : > { %s3496_s17 = smov %s2553_s1  ;;  %s3497_s18 = smov %s2408_s19 }
 0x25c   : > { %s3498_s19 = smov %s3500_s22  ;;  %60 = sbr.rel (!%p58_p1) target bundleno = 21 (0x15), region = 85 }
 0x261   :  { %1520 = vsyncpa [#allocation11], 1 }
 0x262   :  { %1522 = vsyncpa [#allocation11 + $0x1], 1 }

</bundles_post_ra>
